<compile_context>
chip_gen: v6e
topology: v6e:2x2x1
jax: 0.10.0
libtpu: 0.0.40
codegen_flags: <defaults>
</compile_context>

<pallas_src>
import functools
import math

import numpy as np
import jax
import jax.numpy as jnp
from jax.experimental import pallas as pl
from jax.experimental.pallas import tpu as pltpu

LEAKY_SLOPE = 0.01  # torch.nn.LeakyReLU default


def _leaky(v):
    # max(v, a*v) == LeakyReLU for 0 < a < 1 (one mul + one max on the VPU).
    return jnp.maximum(v, LEAKY_SLOPE * v)


def _round_up(x, m):
    return ((x + m - 1) // m) * m


# ------------------------------ fused kernel --------------------------------

def _make_fused_kernel(block_meta, K, OFF, Lpad, W, B_tile, c_last_pad,
                       c_max_pad, cast_mxu, mxu_dtype):
    """One grid step = B_tile batch elements through ALL blocks.

    Activation layout in scratch: B_tile segments of width W = OFF + Lpad along
    the lane axis; columns [s*W, s*W+OFF) are a zero causal prefix, columns
    [s*W+OFF, (s+1)*W) hold time steps 0..Lpad-1 of batch segment s.
    """
    Wbuf = B_tile * W          # total lane width of one batch tile
    N = Wbuf - OFF             # conv output width covering every segment's data

    def kernel(x_ref, w_ref, out_ref, buf_x, buf_h):
        # Zero every segment's causal left-pad prefix. Done per grid step (not
        # program_id==0 gated): each TensorCore owns its own scratch when the
        # parallel batch axis is sharded across cores. Prefixes are never
        # overwritten afterwards (stores only touch valid data columns).
        if OFF > 0:
            z = jnp.zeros((c_max_pad, OFF), jnp.float32)
            for s in range(B_tile):
                buf_x[:, s * W:s * W + OFF] = z
                buf_h[:, s * W:s * W + OFF] = z

        def read_x(c, a, b):                 # block 0 reads x_ref directly
            return x_ref[0, 0:c, a:b]

        def make_read(buf):
            return lambda c, a, b: buf[0:c, a:b]

        def maybe_cast(v):
            return v.astype(mxu_dtype) if cast_mxu else v

        def conv(read, c_src, pad, d, w_off, c_out, b_off):
            # K accumulating MXU dots on shifted windows of the source buffer;
            # no im2col temporary. Output column c' <-> buffer column OFF + c'.
            acc = None
            for j in range(K):
                a0 = OFF - pad + j * d
                lhs = w_ref[0:c_out, w_off + j * c_src:w_off + (j + 1) * c_src]
                rhs = maybe_cast(read(c_src, a0, a0 + N))
                p = jnp.dot(lhs, rhs, preferred_element_type=jnp.float32)
                acc = p if acc is None else acc + p
            bias = w_ref[0:c_out, b_off:b_off + 1].astype(jnp.float32)
            return acc + bias

        read_src = read_x
        n_blocks = len(block_meta)
        # TODO(synk): for large depth, fold the uniform middle blocks into a
        # lax.fori_loop over stacked weights + an SMEM dilation table instead
        # of full Python unrolling (bounds vreg live ranges / code size).
        for bi, m in enumerate(block_meta):
            d = m["dilation"]
            pad = (K - 1) * d
            cin, cout = m["c_in"], m["c_out"]

            # conv1 -> chomp -> LeakyReLU; store only each segment's valid
            # columns so the zero prefixes stay clean.
            h1 = _leaky(conv(read_src, cin, pad, d, m["w1"], cout, m["b1"]))
            for s in range(B_tile):
                buf_h[0:cout, s * W + OFF:s * W + OFF + Lpad] = (
                    h1[:, s * W:s * W + Lpad])

            # conv2 -> chomp -> LeakyReLU
            h2 = _leaky(conv(make_read(buf_h), cout, pad, d,
                             m["w2"], cout, m["b2"]))

            # Residual branch (identity or 1x1 conv), read from the block input
            # BEFORE buf_x is overwritten. NOTE: every read slices exactly
            # [0:c_src] rows; rows above that may hold stale data by design.
            x_in = read_src(cin, OFF, Wbuf)
            if m["has_res"]:
                wr = w_ref[0:cout, m["wr"]:m["wr"] + cin]
                res = jnp.dot(wr, maybe_cast(x_in),
                              preferred_element_type=jnp.float32)
                res = res + w_ref[0:cout, m["br"]:m["br"] + 1].astype(jnp.float32)
            else:
                res = x_in                   # cin == cout in this case

            y = h2 + res   # final=False for every CausalCNN block -> no relu

            if bi == n_blocks - 1:
                # Last block: write straight to the output block.
                for s in range(B_tile):
                    out_ref[s] = y[:, s * W:s * W + Lpad].astype(out_ref.dtype)
            else:
                for s in range(B_tile):
                    buf_x[0:cout, s * W + OFF:s * W + OFF + Lpad] = (
                        y[:, s * W:s * W + Lpad])
                read_src = make_read(buf_x)

    return kernel


# ----------------------- host-side parameter packing ------------------------

def _w_chunks(w, c_out_pad, c_in_pad):
    """(K, c_out, c_in) -> (c_out_pad, K*c_in_pad); chunk j at cols [j*c_in_pad)."""
    Kk, c_out, c_in = w.shape
    out = jnp.zeros((c_out_pad, Kk * c_in_pad), jnp.float32)
    for j in range(Kk):
        out = out.at[:c_out, j * c_in_pad:j * c_in_pad + c_in].set(w[j])
    return out


def _pad2(w, r, c):
    return jnp.zeros((r, c), jnp.float32).at[:w.shape[0], :w.shape[1]].set(w)


def causal_cnn_forward(x, blocks, kernel_size, *, batch_tile=8,
                       mxu_dtype=jnp.float32):
    """x: (B, C_in, L) float32. blocks: output of init_causal_cnn.

    Returns the channel/lane padded output (B, c_out_pad, Lpad); the consumer
    trims [:, :out_channels, :L] (kept out of this wrapper so no standalone
    XLA slice re-copies the whole result).
    """
    B, C_in, L = x.shape
    K = kernel_size
    Lpad = _round_up(L, 128)
    max_dil = max(d for _, d in blocks)
    pad_max = (K - 1) * max_dil
    OFF = _round_up(pad_max, 128) if pad_max > 0 else 0   # lane-aligned prefix
    W = OFF + Lpad

    B_tile = max(1, min(batch_tile, B))
    NT = pl.cdiv(B, B_tile)
    B_pad = NT * B_tile

    cast_mxu = np.dtype(mxu_dtype) != np.dtype(jnp.float32)

    # ---- pack every weight / bias into one lane-dense slab -----------------
    c0_pad = _round_up(C_in, 8)
    c_max_pad = c0_pad
    col = 0
    entries = []          # (col_off, padded 2-D array)
    block_meta = []

    def alloc(arr):
        nonlocal col
        off = col
        col += arr.shape[1]
        entries.append((off, arr))
        return off

    for (w1, b1, w2, b2, wr, br), dilation in blocks:
        c_out = w1.shape[1]
        c_in_b = w1.shape[2]
        c_in_pad = _round_up(c_in_b, 8)
        c_out_pad = _round_up(c_out, 8)
        c_max_pad = max(c_max_pad, c_in_pad, c_out_pad)
        has_res = wr is not None
        m = dict(dilation=dilation, c_in=c_in_pad, c_out=c_out_pad,
                 has_res=has_res)
        m["w1"] = alloc(_w_chunks(w1, c_out_pad, c_in_pad))
        m["b1"] = alloc(_pad2(b1, c_out_pad, 1))
        m["w2"] = alloc(_w_chunks(w2, c_out_pad, c_out_pad))
        m["b2"] = alloc(_pad2(b2, c_out_pad, 1))
        if has_res:
            m["wr"] = alloc(_pad2(wr, c_out_pad, c_in_pad))
            m["br"] = alloc(_pad2(br, c_out_pad, 1))
        block_meta.append(m)

    c_last = blocks[-1][0][2].shape[1]          # true output channel count
    c_last_pad = _round_up(c_last, 8)

    slab_cols = _round_up(max(col, 128), 128)
    slab = jnp.zeros((c_max_pad, slab_cols), jnp.float32)
    for off, arr in entries:
        slab = slab.at[:arr.shape[0], off:off + arr.shape[1]].set(arr)
    slab = slab.astype(mxu_dtype)

    # ---- host-pad x into the segmented lane-dense layout --------------------
    # (NT, c0_pad, B_tile*W): per segment a zero causal prefix of OFF columns
    # followed by Lpad lane-padded time steps, so block 0 reads x_ref directly
    # (no in-kernel staging copy). Zero padding is exact: padded channels carry
    # zero weights/biases and padded (future) time steps cannot influence
    # positions < L because every conv is causal.
    xr = x.astype(jnp.float32)
    if B_pad != B:
        xr = jnp.pad(xr, ((0, B_pad - B), (0, 0), (0, 0)))
    xr = xr.reshape(NT, B_tile, C_in, L).transpose(0, 2, 1, 3)
    xp = jnp.zeros((NT, c0_pad, B_tile, W), jnp.float32)
    xp = xp.at[:, :C_in, :, OFF:OFF + L].set(xr)
    xp = xp.reshape(NT, c0_pad, B_tile * W)

    kernel = _make_fused_kernel(block_meta, K, OFF, Lpad, W, B_tile,
                                c_last_pad, c_max_pad, cast_mxu, mxu_dtype)

    in_specs = [
        pl.BlockSpec((1, c0_pad, B_tile * W), lambda t: (t, 0, 0)),
        pl.BlockSpec((c_max_pad, slab_cols), lambda t: (0, 0)),  # stays resident
    ]
    out_specs = pl.BlockSpec((B_tile, c_last_pad, Lpad), lambda t: (t, 0, 0))

    # Advisory cost estimate for XLA's scheduler.
    N = B_tile * W - OFF
    flops = 0
    for m in block_meta:
        flops += 2 * NT * N * K * m["c_in"] * m["c_out"]
        flops += 2 * NT * N * K * m["c_out"] * m["c_out"]
        if m["has_res"]:
            flops += 2 * NT * N * m["c_in"] * m["c_out"]
    bytes_accessed = int(xp.size * 4 + B_pad * c_last_pad * Lpad * 4
                         + slab.size * slab.dtype.itemsize)
    cost = pl.CostEstimate(flops=flops, transcendentals=0,
                           bytes_accessed=bytes_accessed)

    # Explicit VMEM budget (v7x has only 64 MiB per TensorCore; v5e default
    # scoped limit is 16 MiB).
    vmem_need = (2 * c_max_pad * B_tile * W * 4            # 2 activation scratches
                 + 2 * c0_pad * B_tile * W * 4              # double-buffered x blk
                 + 2 * B_tile * c_last_pad * Lpad * 4       # double-buffered out blk
                 + 2 * slab.size * slab.dtype.itemsize)     # weight slab
    vmem_limit = int(min(max(2 * vmem_need, 16 * 2**20), 64 * 2**20))

    out_full = pl.pallas_call(
        kernel,
        out_shape=jax.ShapeDtypeStruct((B_pad, c_last_pad, Lpad), jnp.float32),
        grid=(NT,),
        in_specs=in_specs,
        out_specs=out_specs,
        scratch_shapes=[pltpu.VMEM((c_max_pad, B_tile * W), jnp.float32),
                        pltpu.VMEM((c_max_pad, B_tile * W), jnp.float32)],
        compiler_params=pltpu.CompilerParams(
            dimension_semantics=("parallel",),
            vmem_limit_bytes=vmem_limit),
        cost_estimate=cost,
    )(xp, slab)

    return out_full[:B] if B_pad != B else out_full


# ----------------------------- parameter setup ------------------------------

def _init_conv(key, c_out, c_in, k):
    """PyTorch-like Conv1d init; weight (k, c_out, c_in), bias (c_out, 1)."""
    bound = 1.0 / math.sqrt(c_in * k)
    kw, kb = jax.random.split(key)
    w = jax.random.uniform(kw, (k, c_out, c_in), jnp.float32, -bound, bound)
    b = jax.random.uniform(kb, (c_out, 1), jnp.float32, -bound, bound)
    return w, b


def init_causal_cnn(key, in_channels, channels, depth, out_channels, kernel_size):
    """Per-block params + dilations matching CausalCNN(forward=True)."""
    blocks = []
    dilation = 1
    c_in = in_channels
    for i in range(depth + 1):
        is_last = (i == depth)
        c_out = out_channels if is_last else channels
        key, k1, k2, k3 = jax.random.split(key, 4)
        w1, b1 = _init_conv(k1, c_out, c_in, kernel_size)
        w2, b2 = _init_conv(k2, c_out, c_out, kernel_size)
        if c_in != c_out:
            wr2, br = _init_conv(k3, c_out, c_in, 1)
            wr = wr2[0]                    # (c_out, c_in) 1x1 conv
        else:
            wr, br = None, None
        blocks.append(((w1, b1, w2, b2, wr, br), dilation))
        dilation *= 2
        c_in = c_out
    return blocks


# ------------------------- pure-JAX reference (check) -----------------------

def _ref_causal_conv(x, w, b, dilation):
    K = w.shape[0]
    pad = (K - 1) * dilation
    xpad = jnp.pad(x, ((0, 0), (0, 0), (pad, 0)))
    L = x.shape[2]
    out = jnp.zeros((x.shape[0], w.shape[1], L), jnp.float32)
    for j in range(K):
        out = out + jnp.einsum('oc,bcl->bol', w[j],
                               xpad[:, :, j * dilation:j * dilation + L])
    return out + b[None]


def _ref_block(x, params, dilation):
    w1, b1, w2, b2, wr, br = params
    h = _leaky(_ref_causal_conv(x, w1, b1, dilation))
    h = _leaky(_ref_causal_conv(h, w2, b2, dilation))
    res = x if wr is None else (jnp.einsum('oc,bcl->bol', wr, x) + br[None])
    return h + res


def _ref_forward(x, blocks):
    for params, dilation in blocks:
        x = _ref_block(x, params, dilation)
    return x


# ----------------------------------- main -----------------------------------

if __name__ == "__main__":
    B, in_channels, channels, depth, out_channels, kernel_size, L = 2, 4, 8, 2, 8, 3, 16

    key = jax.random.PRNGKey(0)
    kx, kp = jax.random.split(key)
    x = jax.random.normal(kx, (B, in_channels, L), jnp.float32)

    blocks = init_causal_cnn(kp, in_channels, channels, depth,
                             out_channels, kernel_size)
    ref = _ref_forward(x, blocks)

    # f32 MXU operands: exact check against the pure-JAX reference.
    run_f32 = jax.jit(functools.partial(causal_cnn_forward, blocks=blocks,
                                        kernel_size=kernel_size,
                                        batch_tile=8,
                                        mxu_dtype=jnp.float32))
    out = run_f32(x)
    jax.block_until_ready(out)
    got = out[:, :out_channels, :L]          # trim fused into the consumer
    assert got.shape == (B, out_channels, L), got.shape
    assert jnp.allclose(got, ref, atol=1e-4, rtol=1e-4), \
        float(jnp.max(jnp.abs(got - ref)))

    # bf16 MXU operands (f32 accumulation / VPU math): loose numerical check.
    run_bf16 = jax.jit(functools.partial(causal_cnn_forward, blocks=blocks,
                                         kernel_size=kernel_size,
                                         batch_tile=8,
                                         mxu_dtype=jnp.bfloat16))
    out_bf16 = run_bf16(x)
    jax.block_until_ready(out_bf16)
    err = float(jnp.max(jnp.abs(out_bf16[:, :out_channels, :L] - ref)))
    scale = float(jnp.max(jnp.abs(ref))) + 1.0
    assert err <= 5e-2 * scale, (err, scale)

    print("KERNEL_OK")
</pallas_src>

<mosaic_0001>
module attributes {stable_mosaic.version = 11 : i64} {
  func.func @kernel(%arg0: i32, %arg1: memref<1x8x512xf32, #tpu.memory_space<vmem>>, %arg2: memref<8x256xf32, #tpu.memory_space<vmem>>, %arg3: memref<2x8x128xf32, #tpu.memory_space<vmem>>, %arg4: memref<8x512xf32, #tpu.memory_space<vmem>>, %arg5: memref<8x512xf32, #tpu.memory_space<vmem>>) attributes {dimension_semantics = [#tpu.dimension_semantics<parallel>], iteration_bounds = array<i64: 1>, scalar_prefetch = 0 : i64, scratch_operands = 2 : i64, tpu.core_type = #tpu.core_type<tc>, window_params = [{transform_indices = @transform_0, window_bounds = array<i64: 1, 8, 512>}, {pipeline_mode = #tpu.pipeline_mode<synchronous>, transform_indices = @transform_1, window_bounds = array<i64: 8, 256>}, {transform_indices = @transform_2, window_bounds = array<i64: 2, 8, 128>}]} {
    %cst = arith.constant 0.000000e+00 : f32
    %0 = vector.broadcast %cst : f32 to vector<8x128xf32>
    %c0 = arith.constant 0 : index
    %c0_0 = arith.constant 0 : index
    %1 = vector.load %arg4[%c0, %c0_0] : memref<8x512xf32, #tpu.memory_space<vmem>>, vector<8x128xf32>
    tpu.vector_store %arg4[%c0, %c0_0], %0 {strides = array<i32>} : memref<8x512xf32, #tpu.memory_space<vmem>>, vector<8x128xf32>,
    %c0_1 = arith.constant 0 : index
    %c0_2 = arith.constant 0 : index
    %2 = vector.load %arg5[%c0_1, %c0_2] : memref<8x512xf32, #tpu.memory_space<vmem>>, vector<8x128xf32>
    tpu.vector_store %arg5[%c0_1, %c0_2], %0 {strides = array<i32>} : memref<8x512xf32, #tpu.memory_space<vmem>>, vector<8x128xf32>,
    %c0_3 = arith.constant 0 : index
    %c256 = arith.constant 256 : index
    %3 = vector.load %arg4[%c0_3, %c256] : memref<8x512xf32, #tpu.memory_space<vmem>>, vector<8x128xf32>
    tpu.vector_store %arg4[%c0_3, %c256], %0 {strides = array<i32>} : memref<8x512xf32, #tpu.memory_space<vmem>>, vector<8x128xf32>,
    %c0_4 = arith.constant 0 : index
    %c256_5 = arith.constant 256 : index
    %4 = vector.load %arg5[%c0_4, %c256_5] : memref<8x512xf32, #tpu.memory_space<vmem>>, vector<8x128xf32>
    tpu.vector_store %arg5[%c0_4, %c256_5], %0 {strides = array<i32>} : memref<8x512xf32, #tpu.memory_space<vmem>>, vector<8x128xf32>,
    %c0_6 = arith.constant 0 : index
    %c0_7 = arith.constant 0 : index
    %5 = vector.load %arg2[%c0_6, %c0_7] : memref<8x256xf32, #tpu.memory_space<vmem>>, vector<8x8xf32>
    %c0_8 = arith.constant 0 : index
    %c0_9 = arith.constant 0 : index
    %c126 = arith.constant 126 : index
    %6 = vector.load %arg1[%c0_8, %c0_9, %c126] : memref<1x8x512xf32, #tpu.memory_space<vmem>>, vector<1x8x384xf32>
    %7 = vector.shape_cast %6 : vector<1x8x384xf32> to vector<8x384xf32>
    %cst_10 = arith.constant dense<0.000000e+00> : vector<8x384xf32>
    %8 = tpu.matmul %5, %7, %cst_10 {dimension_numbers = #tpu.dot_dimension_numbers<[1], [0], [0], [1], [0, 0, 1, 1], [], []>} : vector<8x8xf32>, vector<8x384xf32>, vector<8x384xf32> -> vector<8x384xf32>
    %c0_11 = arith.constant 0 : index
    %c8 = arith.constant 8 : index
    %9 = vector.load %arg2[%c0_11, %c8] : memref<8x256xf32, #tpu.memory_space<vmem>>, vector<8x8xf32>
    %c0_12 = arith.constant 0 : index
    %c0_13 = arith.constant 0 : index
    %c127 = arith.constant 127 : index
    %10 = vector.load %arg1[%c0_12, %c0_13, %c127] : memref<1x8x512xf32, #tpu.memory_space<vmem>>, vector<1x8x384xf32>
    %11 = vector.shape_cast %10 : vector<1x8x384xf32> to vector<8x384xf32>
    %cst_14 = arith.constant dense<0.000000e+00> : vector<8x384xf32>
    %12 = tpu.matmul %9, %11, %cst_14 {dimension_numbers = #tpu.dot_dimension_numbers<[1], [0], [0], [1], [0, 0, 1, 1], [], []>} : vector<8x8xf32>, vector<8x384xf32>, vector<8x384xf32> -> vector<8x384xf32>
    %13 = arith.addf %8, %12 : vector<8x384xf32>
    %c0_15 = arith.constant 0 : index
    %c16 = arith.constant 16 : index
    %14 = vector.load %arg2[%c0_15, %c16] : memref<8x256xf32, #tpu.memory_space<vmem>>, vector<8x8xf32>
    %c0_16 = arith.constant 0 : index
    %c0_17 = arith.constant 0 : index
    %c128 = arith.constant 128 : index
    %15 = vector.load %arg1[%c0_16, %c0_17, %c128] : memref<1x8x512xf32, #tpu.memory_space<vmem>>, vector<1x8x384xf32>
    %16 = vector.shape_cast %15 : vector<1x8x384xf32> to vector<8x384xf32>
    %cst_18 = arith.constant dense<0.000000e+00> : vector<8x384xf32>
    %17 = tpu.matmul %14, %16, %cst_18 {dimension_numbers = #tpu.dot_dimension_numbers<[1], [0], [0], [1], [0, 0, 1, 1], [], []>} : vector<8x8xf32>, vector<8x384xf32>, vector<8x384xf32> -> vector<8x384xf32>
    %18 = arith.addf %13, %17 : vector<8x384xf32>
    %c0_19 = arith.constant 0 : index
    %c24 = arith.constant 24 : index
    %19 = vector.load %arg2[%c0_19, %c24] : memref<8x256xf32, #tpu.memory_space<vmem>>, vector<8x1xf32>
    %20 = vector.broadcast %19 : vector<8x1xf32> to vector<8x384xf32>
    %21 = arith.addf %18, %20 : vector<8x384xf32>
    %cst_20 = arith.constant 0.00999999977 : f32
    %22 = vector.broadcast %cst_20 : f32 to vector<8x384xf32>
    %23 = arith.mulf %22, %21 : vector<8x384xf32>
    %24 = arith.maximumf %21, %23 : vector<8x384xf32>
    %25 = vector.extract_strided_slice %24 {offsets = [0, 0], sizes = [8, 128], strides = [1, 1]} : vector<8x384xf32> to vector<8x128xf32>
    %c0_21 = arith.constant 0 : index
    %c128_22 = arith.constant 128 : index
    %26 = vector.load %arg5[%c0_21, %c128_22] : memref<8x512xf32, #tpu.memory_space<vmem>>, vector<8x128xf32>
    tpu.vector_store %arg5[%c0_21, %c128_22], %25 {strides = array<i32>} : memref<8x512xf32, #tpu.memory_space<vmem>>, vector<8x128xf32>,
    %27 = vector.extract_strided_slice %24 {offsets = [0, 256], sizes = [8, 128], strides = [1, 1]} : vector<8x384xf32> to vector<8x128xf32>
    %c0_23 = arith.constant 0 : index
    %c384 = arith.constant 384 : index
    %28 = vector.load %arg5[%c0_23, %c384] : memref<8x512xf32, #tpu.memory_space<vmem>>, vector<8x128xf32>
    tpu.vector_store %arg5[%c0_23, %c384], %27 {strides = array<i32>} : memref<8x512xf32, #tpu.memory_space<vmem>>, vector<8x128xf32>,
    %c0_24 = arith.constant 0 : index
    %c25 = arith.constant 25 : index
    %29 = vector.load %arg2[%c0_24, %c25] : memref<8x256xf32, #tpu.memory_space<vmem>>, vector<8x8xf32>
    %c0_25 = arith.constant 0 : index
    %c126_26 = arith.constant 126 : index
    %30 = vector.load %arg5[%c0_25, %c126_26] : memref<8x512xf32, #tpu.memory_space<vmem>>, vector<8x384xf32>
    %cst_27 = arith.constant dense<0.000000e+00> : vector<8x384xf32>
    %31 = tpu.matmul %29, %30, %cst_27 {dimension_numbers = #tpu.dot_dimension_numbers<[1], [0], [0], [1], [0, 0, 1, 1], [], []>} : vector<8x8xf32>, vector<8x384xf32>, vector<8x384xf32> -> vector<8x384xf32>
    %c0_28 = arith.constant 0 : index
    %c33 = arith.constant 33 : index
    %32 = vector.load %arg2[%c0_28, %c33] : memref<8x256xf32, #tpu.memory_space<vmem>>, vector<8x8xf32>
    %c0_29 = arith.constant 0 : index
    %c127_30 = arith.constant 127 : index
    %33 = vector.load %arg5[%c0_29, %c127_30] : memref<8x512xf32, #tpu.memory_space<vmem>>, vector<8x384xf32>
    %cst_31 = arith.constant dense<0.000000e+00> : vector<8x384xf32>
    %34 = tpu.matmul %32, %33, %cst_31 {dimension_numbers = #tpu.dot_dimension_numbers<[1], [0], [0], [1], [0, 0, 1, 1], [], []>} : vector<8x8xf32>, vector<8x384xf32>, vector<8x384xf32> -> vector<8x384xf32>
    %35 = arith.addf %31, %34 : vector<8x384xf32>
    %c0_32 = arith.constant 0 : index
    %c41 = arith.constant 41 : index
    %36 = vector.load %arg2[%c0_32, %c41] : memref<8x256xf32, #tpu.memory_space<vmem>>, vector<8x8xf32>
    %c0_33 = arith.constant 0 : index
    %c128_34 = arith.constant 128 : index
    %37 = vector.load %arg5[%c0_33, %c128_34] : memref<8x512xf32, #tpu.memory_space<vmem>>, vector<8x384xf32>
    %cst_35 = arith.constant dense<0.000000e+00> : vector<8x384xf32>
    %38 = tpu.matmul %36, %37, %cst_35 {dimension_numbers = #tpu.dot_dimension_numbers<[1], [0], [0], [1], [0, 0, 1, 1], [], []>} : vector<8x8xf32>, vector<8x384xf32>, vector<8x384xf32> -> vector<8x384xf32>
    %39 = arith.addf %35, %38 : vector<8x384xf32>
    %c0_36 = arith.constant 0 : index
    %c49 = arith.constant 49 : index
    %40 = vector.load %arg2[%c0_36, %c49] : memref<8x256xf32, #tpu.memory_space<vmem>>, vector<8x1xf32>
    %41 = vector.broadcast %40 : vector<8x1xf32> to vector<8x384xf32>
    %42 = arith.addf %39, %41 : vector<8x384xf32>
    %cst_37 = arith.constant 0.00999999977 : f32
    %43 = vector.broadcast %cst_37 : f32 to vector<8x384xf32>
    %44 = arith.mulf %43, %42 : vector<8x384xf32>
    %45 = arith.maximumf %42, %44 : vector<8x384xf32>
    %c0_38 = arith.constant 0 : index
    %c0_39 = arith.constant 0 : index
    %c128_40 = arith.constant 128 : index
    %46 = vector.load %arg1[%c0_38, %c0_39, %c128_40] : memref<1x8x512xf32, #tpu.memory_space<vmem>>, vector<1x8x384xf32>
    %47 = vector.shape_cast %46 : vector<1x8x384xf32> to vector<8x384xf32>
    %c0_41 = arith.constant 0 : index
    %c50 = arith.constant 50 : index
    %48 = vector.load %arg2[%c0_41, %c50] : memref<8x256xf32, #tpu.memory_space<vmem>>, vector<8x8xf32>
    %cst_42 = arith.constant dense<0.000000e+00> : vector<8x384xf32>
    %49 = tpu.matmul %48, %47, %cst_42 {dimension_numbers = #tpu.dot_dimension_numbers<[1], [0], [0], [1], [0, 0, 1, 1], [], []>} : vector<8x8xf32>, vector<8x384xf32>, vector<8x384xf32> -> vector<8x384xf32>
    %c0_43 = arith.constant 0 : index
    %c58 = arith.constant 58 : index
    %50 = vector.load %arg2[%c0_43, %c58] : memref<8x256xf32, #tpu.memory_space<vmem>>, vector<8x1xf32>
    %51 = vector.broadcast %50 : vector<8x1xf32> to vector<8x384xf32>
    %52 = arith.addf %49, %51 : vector<8x384xf32>
    %53 = arith.addf %45, %52 : vector<8x384xf32>
    %54 = vector.extract_strided_slice %53 {offsets = [0, 0], sizes = [8, 128], strides = [1, 1]} : vector<8x384xf32> to vector<8x128xf32>
    %c0_44 = arith.constant 0 : index
    %c128_45 = arith.constant 128 : index
    %55 = vector.load %arg4[%c0_44, %c128_45] : memref<8x512xf32, #tpu.memory_space<vmem>>, vector<8x128xf32>
    tpu.vector_store %arg4[%c0_44, %c128_45], %54 {strides = array<i32>} : memref<8x512xf32, #tpu.memory_space<vmem>>, vector<8x128xf32>,
    %56 = vector.extract_strided_slice %53 {offsets = [0, 256], sizes = [8, 128], strides = [1, 1]} : vector<8x384xf32> to vector<8x128xf32>
    %c0_46 = arith.constant 0 : index
    %c384_47 = arith.constant 384 : index
    %57 = vector.load %arg4[%c0_46, %c384_47] : memref<8x512xf32, #tpu.memory_space<vmem>>, vector<8x128xf32>
    tpu.vector_store %arg4[%c0_46, %c384_47], %56 {strides = array<i32>} : memref<8x512xf32, #tpu.memory_space<vmem>>, vector<8x128xf32>,
    %c0_48 = arith.constant 0 : index
    %c59 = arith.constant 59 : index
    %58 = vector.load %arg2[%c0_48, %c59] : memref<8x256xf32, #tpu.memory_space<vmem>>, vector<8x8xf32>
    %c0_49 = arith.constant 0 : index
    %c124 = arith.constant 124 : index
    %59 = vector.load %arg4[%c0_49, %c124] : memref<8x512xf32, #tpu.memory_space<vmem>>, vector<8x384xf32>
    %cst_50 = arith.constant dense<0.000000e+00> : vector<8x384xf32>
    %60 = tpu.matmul %58, %59, %cst_50 {dimension_numbers = #tpu.dot_dimension_numbers<[1], [0], [0], [1], [0, 0, 1, 1], [], []>} : vector<8x8xf32>, vector<8x384xf32>, vector<8x384xf32> -> vector<8x384xf32>
    %c0_51 = arith.constant 0 : index
    %c67 = arith.constant 67 : index
    %61 = vector.load %arg2[%c0_51, %c67] : memref<8x256xf32, #tpu.memory_space<vmem>>, vector<8x8xf32>
    %c0_52 = arith.constant 0 : index
    %c126_53 = arith.constant 126 : index
    %62 = vector.load %arg4[%c0_52, %c126_53] : memref<8x512xf32, #tpu.memory_space<vmem>>, vector<8x384xf32>
    %cst_54 = arith.constant dense<0.000000e+00> : vector<8x384xf32>
    %63 = tpu.matmul %61, %62, %cst_54 {dimension_numbers = #tpu.dot_dimension_numbers<[1], [0], [0], [1], [0, 0, 1, 1], [], []>} : vector<8x8xf32>, vector<8x384xf32>, vector<8x384xf32> -> vector<8x384xf32>
    %64 = arith.addf %60, %63 : vector<8x384xf32>
    %c0_55 = arith.constant 0 : index
    %c75 = arith.constant 75 : index
    %65 = vector.load %arg2[%c0_55, %c75] : memref<8x256xf32, #tpu.memory_space<vmem>>, vector<8x8xf32>
    %c0_56 = arith.constant 0 : index
    %c128_57 = arith.constant 128 : index
    %66 = vector.load %arg4[%c0_56, %c128_57] : memref<8x512xf32, #tpu.memory_space<vmem>>, vector<8x384xf32>
    %cst_58 = arith.constant dense<0.000000e+00> : vector<8x384xf32>
    %67 = tpu.matmul %65, %66, %cst_58 {dimension_numbers = #tpu.dot_dimension_numbers<[1], [0], [0], [1], [0, 0, 1, 1], [], []>} : vector<8x8xf32>, vector<8x384xf32>, vector<8x384xf32> -> vector<8x384xf32>
    %68 = arith.addf %64, %67 : vector<8x384xf32>
    %c0_59 = arith.constant 0 : index
    %c83 = arith.constant 83 : index
    %69 = vector.load %arg2[%c0_59, %c83] : memref<8x256xf32, #tpu.memory_space<vmem>>, vector<8x1xf32>
    %70 = vector.broadcast %69 : vector<8x1xf32> to vector<8x384xf32>
    %71 = arith.addf %68, %70 : vector<8x384xf32>
    %cst_60 = arith.constant 0.00999999977 : f32
    %72 = vector.broadcast %cst_60 : f32 to vector<8x384xf32>
    %73 = arith.mulf %72, %71 : vector<8x384xf32>
    %74 = arith.maximumf %71, %73 : vector<8x384xf32>
    %75 = vector.extract_strided_slice %74 {offsets = [0, 0], sizes = [8, 128], strides = [1, 1]} : vector<8x384xf32> to vector<8x128xf32>
    %c0_61 = arith.constant 0 : index
    %c128_62 = arith.constant 128 : index
    %76 = vector.load %arg5[%c0_61, %c128_62] : memref<8x512xf32, #tpu.memory_space<vmem>>, vector<8x128xf32>
    tpu.vector_store %arg5[%c0_61, %c128_62], %75 {strides = array<i32>} : memref<8x512xf32, #tpu.memory_space<vmem>>, vector<8x128xf32>,
    %77 = vector.extract_strided_slice %74 {offsets = [0, 256], sizes = [8, 128], strides = [1, 1]} : vector<8x384xf32> to vector<8x128xf32>
    %c0_63 = arith.constant 0 : index
    %c384_64 = arith.constant 384 : index
    %78 = vector.load %arg5[%c0_63, %c384_64] : memref<8x512xf32, #tpu.memory_space<vmem>>, vector<8x128xf32>
    tpu.vector_store %arg5[%c0_63, %c384_64], %77 {strides = array<i32>} : memref<8x512xf32, #tpu.memory_space<vmem>>, vector<8x128xf32>,
    %c0_65 = arith.constant 0 : index
    %c84 = arith.constant 84 : index
    %79 = vector.load %arg2[%c0_65, %c84] : memref<8x256xf32, #tpu.memory_space<vmem>>, vector<8x8xf32>
    %c0_66 = arith.constant 0 : index
    %c124_67 = arith.constant 124 : index
    %80 = vector.load %arg5[%c0_66, %c124_67] : memref<8x512xf32, #tpu.memory_space<vmem>>, vector<8x384xf32>
    %cst_68 = arith.constant dense<0.000000e+00> : vector<8x384xf32>
    %81 = tpu.matmul %79, %80, %cst_68 {dimension_numbers = #tpu.dot_dimension_numbers<[1], [0], [0], [1], [0, 0, 1, 1], [], []>} : vector<8x8xf32>, vector<8x384xf32>, vector<8x384xf32> -> vector<8x384xf32>
    %c0_69 = arith.constant 0 : index
    %c92 = arith.constant 92 : index
    %82 = vector.load %arg2[%c0_69, %c92] : memref<8x256xf32, #tpu.memory_space<vmem>>, vector<8x8xf32>
    %c0_70 = arith.constant 0 : index
    %c126_71 = arith.constant 126 : index
    %83 = vector.load %arg5[%c0_70, %c126_71] : memref<8x512xf32, #tpu.memory_space<vmem>>, vector<8x384xf32>
    %cst_72 = arith.constant dense<0.000000e+00> : vector<8x384xf32>
    %84 = tpu.matmul %82, %83, %cst_72 {dimension_numbers = #tpu.dot_dimension_numbers<[1], [0], [0], [1], [0, 0, 1, 1], [], []>} : vector<8x8xf32>, vector<8x384xf32>, vector<8x384xf32> -> vector<8x384xf32>
    %85 = arith.addf %81, %84 : vector<8x384xf32>
    %c0_73 = arith.constant 0 : index
    %c100 = arith.constant 100 : index
    %86 = vector.load %arg2[%c0_73, %c100] : memref<8x256xf32, #tpu.memory_space<vmem>>, vector<8x8xf32>
    %c0_74 = arith.constant 0 : index
    %c128_75 = arith.constant 128 : index
    %87 = vector.load %arg5[%c0_74, %c128_75] : memref<8x512xf32, #tpu.memory_space<vmem>>, vector<8x384xf32>
    %cst_76 = arith.constant dense<0.000000e+00> : vector<8x384xf32>
    %88 = tpu.matmul %86, %87, %cst_76 {dimension_numbers = #tpu.dot_dimension_numbers<[1], [0], [0], [1], [0, 0, 1, 1], [], []>} : vector<8x8xf32>, vector<8x384xf32>, vector<8x384xf32> -> vector<8x384xf32>
    %89 = arith.addf %85, %88 : vector<8x384xf32>
    %c0_77 = arith.constant 0 : index
    %c108 = arith.constant 108 : index
    %90 = vector.load %arg2[%c0_77, %c108] : memref<8x256xf32, #tpu.memory_space<vmem>>, vector<8x1xf32>
    %91 = vector.broadcast %90 : vector<8x1xf32> to vector<8x384xf32>
    %92 = arith.addf %89, %91 : vector<8x384xf32>
    %cst_78 = arith.constant 0.00999999977 : f32
    %93 = vector.broadcast %cst_78 : f32 to vector<8x384xf32>
    %94 = arith.mulf %93, %92 : vector<8x384xf32>
    %95 = arith.maximumf %92, %94 : vector<8x384xf32>
    %c0_79 = arith.constant 0 : index
    %c128_80 = arith.constant 128 : index
    %96 = vector.load %arg4[%c0_79, %c128_80] : memref<8x512xf32, #tpu.memory_space<vmem>>, vector<8x384xf32>
    %97 = arith.addf %95, %96 : vector<8x384xf32>
    %98 = vector.extract_strided_slice %97 {offsets = [0, 0], sizes = [8, 128], strides = [1, 1]} : vector<8x384xf32> to vector<8x128xf32>
    %c0_81 = arith.constant 0 : index
    %c128_82 = arith.constant 128 : index
    %99 = vector.load %arg4[%c0_81, %c128_82] : memref<8x512xf32, #tpu.memory_space<vmem>>, vector<8x128xf32>
    tpu.vector_store %arg4[%c0_81, %c128_82], %98 {strides = array<i32>} : memref<8x512xf32, #tpu.memory_space<vmem>>, vector<8x128xf32>,
    %100 = vector.extract_strided_slice %97 {offsets = [0, 256], sizes = [8, 128], strides = [1, 1]} : vector<8x384xf32> to vector<8x128xf32>
    %c0_83 = arith.constant 0 : index
    %c384_84 = arith.constant 384 : index
    %101 = vector.load %arg4[%c0_83, %c384_84] : memref<8x512xf32, #tpu.memory_space<vmem>>, vector<8x128xf32>
    tpu.vector_store %arg4[%c0_83, %c384_84], %100 {strides = array<i32>} : memref<8x512xf32, #tpu.memory_space<vmem>>, vector<8x128xf32>,
    %c0_85 = arith.constant 0 : index
    %c109 = arith.constant 109 : index
    %102 = vector.load %arg2[%c0_85, %c109] : memref<8x256xf32, #tpu.memory_space<vmem>>, vector<8x8xf32>
    %c0_86 = arith.constant 0 : index
    %c120 = arith.constant 120 : index
    %103 = vector.load %arg4[%c0_86, %c120] : memref<8x512xf32, #tpu.memory_space<vmem>>, vector<8x384xf32>
    %cst_87 = arith.constant dense<0.000000e+00> : vector<8x384xf32>
    %104 = tpu.matmul %102, %103, %cst_87 {dimension_numbers = #tpu.dot_dimension_numbers<[1], [0], [0], [1], [0, 0, 1, 1], [], []>} : vector<8x8xf32>, vector<8x384xf32>, vector<8x384xf32> -> vector<8x384xf32>
    %c0_88 = arith.constant 0 : index
    %c117 = arith.constant 117 : index
    %105 = vector.load %arg2[%c0_88, %c117] : memref<8x256xf32, #tpu.memory_space<vmem>>, vector<8x8xf32>
    %c0_89 = arith.constant 0 : index
    %c124_90 = arith.constant 124 : index
    %106 = vector.load %arg4[%c0_89, %c124_90] : memref<8x512xf32, #tpu.memory_space<vmem>>, vector<8x384xf32>
    %cst_91 = arith.constant dense<0.000000e+00> : vector<8x384xf32>
    %107 = tpu.matmul %105, %106, %cst_91 {dimension_numbers = #tpu.dot_dimension_numbers<[1], [0], [0], [1], [0, 0, 1, 1], [], []>} : vector<8x8xf32>, vector<8x384xf32>, vector<8x384xf32> -> vector<8x384xf32>
    %108 = arith.addf %104, %107 : vector<8x384xf32>
    %c0_92 = arith.constant 0 : index
    %c125 = arith.constant 125 : index
    %109 = vector.load %arg2[%c0_92, %c125] : memref<8x256xf32, #tpu.memory_space<vmem>>, vector<8x8xf32>
    %c0_93 = arith.constant 0 : index
    %c128_94 = arith.constant 128 : index
    %110 = vector.load %arg4[%c0_93, %c128_94] : memref<8x512xf32, #tpu.memory_space<vmem>>, vector<8x384xf32>
    %cst_95 = arith.constant dense<0.000000e+00> : vector<8x384xf32>
    %111 = tpu.matmul %109, %110, %cst_95 {dimension_numbers = #tpu.dot_dimension_numbers<[1], [0], [0], [1], [0, 0, 1, 1], [], []>} : vector<8x8xf32>, vector<8x384xf32>, vector<8x384xf32> -> vector<8x384xf32>
    %112 = arith.addf %108, %111 : vector<8x384xf32>
    %c0_96 = arith.constant 0 : index
    %c133 = arith.constant 133 : index
    %113 = vector.load %arg2[%c0_96, %c133] : memref<8x256xf32, #tpu.memory_space<vmem>>, vector<8x1xf32>
    %114 = vector.broadcast %113 : vector<8x1xf32> to vector<8x384xf32>
    %115 = arith.addf %112, %114 : vector<8x384xf32>
    %cst_97 = arith.constant 0.00999999977 : f32
    %116 = vector.broadcast %cst_97 : f32 to vector<8x384xf32>
    %117 = arith.mulf %116, %115 : vector<8x384xf32>
    %118 = arith.maximumf %115, %117 : vector<8x384xf32>
    %119 = vector.extract_strided_slice %118 {offsets = [0, 0], sizes = [8, 128], strides = [1, 1]} : vector<8x384xf32> to vector<8x128xf32>
    %c0_98 = arith.constant 0 : index
    %c128_99 = arith.constant 128 : index
    %120 = vector.load %arg5[%c0_98, %c128_99] : memref<8x512xf32, #tpu.memory_space<vmem>>, vector<8x128xf32>
    tpu.vector_store %arg5[%c0_98, %c128_99], %119 {strides = array<i32>} : memref<8x512xf32, #tpu.memory_space<vmem>>, vector<8x128xf32>,
    %121 = vector.extract_strided_slice %118 {offsets = [0, 256], sizes = [8, 128], strides = [1, 1]} : vector<8x384xf32> to vector<8x128xf32>
    %c0_100 = arith.constant 0 : index
    %c384_101 = arith.constant 384 : index
    %122 = vector.load %arg5[%c0_100, %c384_101] : memref<8x512xf32, #tpu.memory_space<vmem>>, vector<8x128xf32>
    tpu.vector_store %arg5[%c0_100, %c384_101], %121 {strides = array<i32>} : memref<8x512xf32, #tpu.memory_space<vmem>>, vector<8x128xf32>,
    %c0_102 = arith.constant 0 : index
    %c134 = arith.constant 134 : index
    %123 = vector.load %arg2[%c0_102, %c134] : memref<8x256xf32, #tpu.memory_space<vmem>>, vector<8x8xf32>
    %c0_103 = arith.constant 0 : index
    %c120_104 = arith.constant 120 : index
    %124 = vector.load %arg5[%c0_103, %c120_104] : memref<8x512xf32, #tpu.memory_space<vmem>>, vector<8x384xf32>
    %cst_105 = arith.constant dense<0.000000e+00> : vector<8x384xf32>
    %125 = tpu.matmul %123, %124, %cst_105 {dimension_numbers = #tpu.dot_dimension_numbers<[1], [0], [0], [1], [0, 0, 1, 1], [], []>} : vector<8x8xf32>, vector<8x384xf32>, vector<8x384xf32> -> vector<8x384xf32>
    %c0_106 = arith.constant 0 : index
    %c142 = arith.constant 142 : index
    %126 = vector.load %arg2[%c0_106, %c142] : memref<8x256xf32, #tpu.memory_space<vmem>>, vector<8x8xf32>
    %c0_107 = arith.constant 0 : index
    %c124_108 = arith.constant 124 : index
    %127 = vector.load %arg5[%c0_107, %c124_108] : memref<8x512xf32, #tpu.memory_space<vmem>>, vector<8x384xf32>
    %cst_109 = arith.constant dense<0.000000e+00> : vector<8x384xf32>
    %128 = tpu.matmul %126, %127, %cst_109 {dimension_numbers = #tpu.dot_dimension_numbers<[1], [0], [0], [1], [0, 0, 1, 1], [], []>} : vector<8x8xf32>, vector<8x384xf32>, vector<8x384xf32> -> vector<8x384xf32>
    %129 = arith.addf %125, %128 : vector<8x384xf32>
    %c0_110 = arith.constant 0 : index
    %c150 = arith.constant 150 : index
    %130 = vector.load %arg2[%c0_110, %c150] : memref<8x256xf32, #tpu.memory_space<vmem>>, vector<8x8xf32>
    %c0_111 = arith.constant 0 : index
    %c128_112 = arith.constant 128 : index
    %131 = vector.load %arg5[%c0_111, %c128_112] : memref<8x512xf32, #tpu.memory_space<vmem>>, vector<8x384xf32>
    %cst_113 = arith.constant dense<0.000000e+00> : vector<8x384xf32>
    %132 = tpu.matmul %130, %131, %cst_113 {dimension_numbers = #tpu.dot_dimension_numbers<[1], [0], [0], [1], [0, 0, 1, 1], [], []>} : vector<8x8xf32>, vector<8x384xf32>, vector<8x384xf32> -> vector<8x384xf32>
    %133 = arith.addf %129, %132 : vector<8x384xf32>
    %c0_114 = arith.constant 0 : index
    %c158 = arith.constant 158 : index
    %134 = vector.load %arg2[%c0_114, %c158] : memref<8x256xf32, #tpu.memory_space<vmem>>, vector<8x1xf32>
    %135 = vector.broadcast %134 : vector<8x1xf32> to vector<8x384xf32>
    %136 = arith.addf %133, %135 : vector<8x384xf32>
    %cst_115 = arith.constant 0.00999999977 : f32
    %137 = vector.broadcast %cst_115 : f32 to vector<8x384xf32>
    %138 = arith.mulf %137, %136 : vector<8x384xf32>
    %139 = arith.maximumf %136, %138 : vector<8x384xf32>
    %c0_116 = arith.constant 0 : index
    %c128_117 = arith.constant 128 : index
    %140 = vector.load %arg4[%c0_116, %c128_117] : memref<8x512xf32, #tpu.memory_space<vmem>>, vector<8x384xf32>
    %141 = arith.addf %139, %140 : vector<8x384xf32>
    %142 = vector.extract_strided_slice %141 {offsets = [0, 0], sizes = [8, 128], strides = [1, 1]} : vector<8x384xf32> to vector<8x128xf32>
    %c0_118 = arith.constant 0 : index
    %c0_119 = arith.constant 0 : index
    %c0_120 = arith.constant 0 : index
    %143 = vector.load %arg3[%c0_118, %c0_119, %c0_120] : memref<2x8x128xf32, #tpu.memory_space<vmem>>, vector<1x8x128xf32>
    %144 = vector.shape_cast %143 : vector<1x8x128xf32> to vector<8x128xf32>
    %145 = vector.shape_cast %142 : vector<8x128xf32> to vector<1x8x128xf32>
    tpu.vector_store %arg3[%c0_118, %c0_119, %c0_120], %145 {strides = array<i32>} : memref<2x8x128xf32, #tpu.memory_space<vmem>>, vector<1x8x128xf32>,
    %146 = vector.extract_strided_slice %141 {offsets = [0, 256], sizes = [8, 128], strides = [1, 1]} : vector<8x384xf32> to vector<8x128xf32>
    %c1 = arith.constant 1 : index
    %c0_121 = arith.constant 0 : index
    %c0_122 = arith.constant 0 : index
    %147 = vector.load %arg3[%c1, %c0_121, %c0_122] : memref<2x8x128xf32, #tpu.memory_space<vmem>>, vector<1x8x128xf32>
    %148 = vector.shape_cast %147 : vector<1x8x128xf32> to vector<8x128xf32>
    %149 = vector.shape_cast %146 : vector<8x128xf32> to vector<1x8x128xf32>
    tpu.vector_store %arg3[%c1, %c0_121, %c0_122], %149 {strides = array<i32>} : memref<2x8x128xf32, #tpu.memory_space<vmem>>, vector<1x8x128xf32>,
    return
  }
  func.func @transform_0(%arg0: i32) -> (i32, i32, i32) {
    %c0_i32 = arith.constant 0 : i32
    %c0_i32_0 = arith.constant 0 : i32
    %c0_i32_1 = arith.constant 0 : i32
    return %arg0, %c0_i32, %c0_i32_0 : i32, i32, i32
  }
  func.func @transform_1(%arg0: i32) -> (i32, i32) {
    %c0_i32 = arith.constant 0 : i32
    %c0_i32_0 = arith.constant 0 : i32
    %c0_i32_1 = arith.constant 0 : i32
    return %c0_i32, %c0_i32_0 : i32, i32
  }
  func.func @transform_2(%arg0: i32) -> (i32, i32, i32) {
    %c0_i32 = arith.constant 0 : i32
    %c0_i32_0 = arith.constant 0 : i32
    %c0_i32_1 = arith.constant 0 : i32
    return %arg0, %c0_i32, %c0_i32_0 : i32, i32, i32
  }
}

</mosaic_0001>

<bundles_post_ra>
// kernel: causal_cnn_forward.1
= control target key start
LH: loop header
LB: loop body
LE: loop exit
PB: predicated region body
PF: predicated region fallthrough
CT: control target
= control target key end

     0   :  { %s3427_s13 = smov 1   ;;  %v3428_v4 = vmov 0.0   ;;  %s3781_s0 = inlined_call_operand.vmem [shape: f32[1,8,512], index: 0, kind: input, shape index: {}]   ;;  %s3782_s1 = inlined_call_operand.vmem [shape: f32[8,256], index: 1, kind: input, shape index: {}]   ;;  %s3783_s2 = inlined_call_operand.hbm [shape: f32[2,8,128], index: 2, kind: output, shape index: {}]  }
   0x1   :  { %v3478_v0 = vld [vmem:[%s3781_s0 + $0x8] sm:$0xff]  ;;  %v17_v1 = vld [vmem:[%s3781_s0] sm:$0xff]  ;;  %v3489_v2 = vld [vmem:[%s3781_s0 + $0x10] sm:$0xff]  ;;  %110 = vmatprep.mubr.f32.mxu0 %v3428_v4  ;;  %3194 = vmatprep.subr.mxu1 %v3428_v4 }
   0x2   :  { %30 = vrot.lane.b32.xlu0 %v3478_v0, %s3427_s13  ;;  %28 = vrot.lane.b32.xlu1 %v17_v1, %s3427_s13  ;;  %v3494_v3 = vld [vmem:[%s3782_s1] sm:$0xff] }
   0x3   :  { %7 = vsyncpa [#allocation5], 0  ;;  %vm3429_vm0 = vmmov 0   ;;  %s3430_s18 = smov 120   ;;  %s3431_s19 = smov 2   ;;  %v3510_v5 = vld [vmem:[%s3781_s0 + $0x18] sm:$0xff] }
   0x4   :  { %3196 = vmatprep.mubr.msk.f32.mxu1 %vm3429_vm0, %v3428_v4  ;;  %v3432_v6 = vmov 24   ;;  %s3433_s22 = smov 112   ;;  %vm36_vm1 = vcmask 7168   ;;  %vm43_vm2 = vcmask 64512   ;;  %vm194_vm3 = vcmask 15360   ;;  %s3434_s0 = smov 95  }
   0x5   :  { %3347 = vset.pattern.permute.xlu0 %v3432_v6  ;;  %s3435_s23 = smov 103   ;;  %s3436_s24 = smov 87   ;;  %v3437_v46 = vmov 49   ;;  %v3438_v47 = vmov 58   ;;  %vm1316_vm4 = vcmask 31744   ;;  %vm2445_vm5 = vcmask 23552  }
   0x6   :  { %32 = vrot.lane.b32.xlu0 %v3489_v2, %s3427_s13  ;;  %22 = vrot.lane.b32.xlu1 %v3494_v3, %s3430_s18  ;;  %s3439_s25 = smov 78   ;;  %s3440_s26 = smov 61  }
   0x7   :  { %3359 = vset.pattern.permute.xlu1 %v3438_v47  ;;  %s3441_s27 = smov 4   ;;  %s3443_s28 = smov 69  }
   0x8   :  { %s3444_s29 = smov 53   ;;  %s3445_s30 = smov 36  }
   0x9   :  { %s3446_s3 = smov 44   ;;  %s3447_s4 = smov 28  }
   0xa   :  { %188 = vrot.lane.b32.xlu0 %v3478_v0, %s3431_s19  ;;  %190 = vrot.lane.b32.xlu1 %v3489_v2, %s3431_s19  ;;  %s3449_s5 = smov 11   ;;  %s3450_s6 = smov 8  }
   0xb   :  { %s3451_s7 = smov 19   ;;  %s3452_s10 = smov 3  }
   0xc   :  { %s3456_s11 = smov 122   ;;  %s3457_s12 = smov 106  }
   0xe   :  { %186 = vrot.lane.b32.xlu0 %v17_v1, %s3431_s19  ;;  %34 = vrot.lane.b32.xlu1 %v3510_v5, %s3427_s13 }
  0x12   :  { %192 = vrot.lane.b32.xlu0 %v3510_v5, %s3431_s19  ;;  %343 = vrot.lane.b32.xlu1 %v3494_v3, %s3433_s22 }
  0x16   :  { %490 = vperm.xlu0 %3347, %v3494_v3   ;;  %3349 = vrot.lane.b32.xlu1 %v3428_v4, %s3427_s13 }
  0x1a   :  { %507 = vrot.lane.b32.xlu0 %v3494_v3, %s3434_s0 }
  0x1b   :  { %3358 = vset.pattern.permute.xlu0 %v3437_v46 }
  0x1e   :  { %3354 = vrot.lane.b32.xlu0 %v3428_v4, %s3431_s19 }
  0x22   :  { %669 = vrot.lane.b32.xlu0 %v3494_v3, %s3435_s23 }
  0x26   :  { %827 = vrot.lane.b32.xlu0 %v3494_v3, %s3436_s24 }
  0x2a   :  { %974 = vperm.xlu0 %3358, %v3494_v3  }
  0x2e   :  { %3361 = vrot.lane.b32.xlu0 %v3428_v4, %s3431_s19 }
  0x32   :  { %3366 = vrot.lane.b32.xlu0 %v3428_v4, %s3441_s27 }
  0x74   :  { %v31_v7 = vpop.permute.xlu0 %30  ;;  %v29_v8 = vpop.permute.xlu1 %28 }
  0x75   :  { %v37_v12 = vsel %vm36_vm1, %v29_v8, %v31_v7 }
  0x78   :  { %v33_v9 = vpop.permute.xlu0 %32  ;;  %v23_v10 = vpop.permute.xlu1 %22 }
  0x79   :  { %v38_v11 = vsel %vm36_vm1, %v31_v7, %v33_v9 }
  0x7a   :  { %76 = vmatprep.subr.mxu0 %v38_v11 }
  0x7b   :  { %77 = vmatpush1.msra.mxu0 %v37_v12 }
  0x7c   :  { %v189_v13 = vpop.permute.xlu0 %188  ;;  %3108 = vmatmul.mubr.msk.f32.vlgmr.msra.gmra.mxu0 %vm43_vm2, %v23_v10  ;;  %v191_v14 = vpop.permute.xlu1 %190 }
  0x7d   :  { %v196_v15 = vsel %vm194_vm3, %v189_v13, %v191_v14  ;;  %267 = vmatprep.mubr.f32.mxu0 %v3428_v4 }
  0x7e   :  { %233 = vmatprep.subr.mxu0 %v196_v15 }
  0x80   :  { %v187_v16 = vpop.permute.xlu0 %186  ;;  %v35_v17 = vpop.permute.xlu1 %34 }
  0x81   :  { %v195_v18 = vsel %vm194_vm3, %v187_v16, %v189_v13  ;;  %v39_v19 = vsel %vm36_vm1, %v33_v9, %v35_v17 }
  0x82   :  { %3195 = vmatpush3.msra.mxu1 %v39_v19  ;;  %234 = vmatpush1.msra.mxu0 %v195_v18 }
  0x83   :  { %3197 = vmatmul.mubr.msk.f32.vlgmr.msra.gmra.mxu1 %vm43_vm2, %v23_v10  ;;  %3110 = vmatmul.mubr.msk.f32.vlgmr.msra.gmra.mxu0 %vm43_vm2, %v3494_v3 }
  0x84   :  { %v193_v20 = vpop.permute.xlu0 %192  ;;  %3199 = vmatprep.subr.mxu1 %v3428_v4  ;;  %377 = vmatprep.subr.mxu0 %v3489_v2  ;;  %v344_v21 = vpop.permute.xlu1 %343 }
  0x85   :  { %v197_v22 = vsel %vm194_vm3, %v191_v14, %v193_v20  ;;  %3201 = vmatprep.mubr.msk.f32.mxu1 %vm3429_vm0, %v3428_v4  ;;  %378 = vmatpush1.msra.mxu0 %v3478_v0 }
  0x86   :  { %3200 = vmatpush3.msra.mxu1 %v197_v22  ;;  %411 = vmatprep.mubr.f32.mxu0 %v3428_v4 }
  0x87   :  { %3202 = vmatmul.mubr.msk.f32.vlgmr.msra.gmra.mxu1 %vm43_vm2, %v3494_v3  ;;  %3112 = vmatmul.mubr.msk.f32.vlgmr.msra.gmra.mxu0 %vm43_vm2, %v344_v21 }
  0x88   :  { %3204 = vmatprep.subr.mxu1 %v3428_v4  ;;  %3206 = vmatprep.mubr.msk.f32.mxu1 %vm3429_vm0, %v3428_v4  ;;  %v3350_v49 = vpop.permute.xlu1 %3349 }
  0x89   :  { %3205 = vmatpush3.msra.mxu1 %v3510_v5  ;;  %593 = vmatprep.mubr.f32.mxu0 %v3428_v4  ;;  %v3352_v51 = vunpack.i.h.bf16 %v3350_v49  ;;  %v3351_v52 = vunpack.i.l.bf16 %v3350_v49 }
  0x8a   :  { %3209 = vmatprep.subr.mxu1 %v3428_v4 }
  0x8b   :  { %3207 = vmatmul.mubr.msk.f32.vlgmr.msra.gmra.mxu1 %vm43_vm2, %v344_v21 }
  0x8c   :  { %3211 = vmatprep.mubr.msk.f32.mxu1 %vm3429_vm0, %v3428_v4 }
  0x91   :  { %v491_v30 = vpop.permute.xlu0 %490 }
  0x95   :  { %v508_v48 = vpop.permute.xlu0 %507 }
  0x99   :  { %v3355_v50 = vpop.permute.xlu0 %3354 }
  0x9a   :  { %v3357_v55 = vunpack.i.h.bf16 %v3355_v50  ;;  %v3356_v56 = vunpack.i.l.bf16 %v3355_v50 }
  0x9d   :  { %v670_v58 = vpop.permute.xlu0 %669 }
  0xa1   :  { %v828_v1 = vpop.permute.xlu0 %827 }
  0xa5   :  { %v975_v13 = vpop.permute.xlu0 %974 }
 0x13c   :  { %v112_v23 = vpop.f32.mrf.mxu0 }
 0x13e   :  { %v114_v24 = vpop.f32.mrf.mxu0 }
 0x143   :  { %v182_v25 = vpop.f32.mrf.mxu1  ;;  %v269_v26 = vpop.f32.mrf.mxu0 }
 0x144   :  { %v270_v29 = vadd.f32 %v269_v26, %v112_v23 }
 0x145   :  { %v3198_v27 = vpop.f32.mrf.mxu1  ;;  %v271_v28 = vpop.f32.mrf.mxu0 }
 0x147   :  { %v339_v31 = vpop.f32.mrf.mxu1  ;;  %v413_v32 = vpop.f32.mrf.mxu0 }
 0x148   :  { %v487_v33 = vadd.f32 %v413_v32, %v270_v29  ;;  %v340_v36 = vadd.f32 %v339_v31, %v182_v25 }
 0x149   :  { %v3203_v34 = vpop.f32.mrf.mxu1  ;;  %v415_v35 = vpop.f32.mrf.mxu0 }
 0x14a   :  { %v493_v37 = vadd.f32 %v491_v30, %v487_v33 }
 0x14b   :  { %v483_v38 = vpop.f32.mrf.mxu1 }
 0x14c   :  { %v495_v39 = vmul.f32 0.01, %v493_v37  ;;  %v488_v40 = vadd.f32 %v483_v38, %v340_v36  ;;  %v3442_v38 = vmov 83  }
 0x14d   :  { %v3208_v41 = vpop.f32.mrf.mxu1  ;;  %3370 = vset.pattern.permute.xlu0 %v3442_v38 }
 0x14e   :  { %v497_v42 = vmax.f32 %v493_v37, %v495_v39  ;;  %v494_v43 = vadd.f32 %v491_v30, %v488_v40  ;;  %v3362_v39 = vpop.permute.xlu0 %3361 }
 0x14f   :  { %v3364_v41 = vunpack.i.h.bf16 %v3362_v39 }
 0x150   :  { %515 = vrot.lane.b32.xlu1 %v497_v42, %s3427_s13  ;;  %v496_v44 = vmul.f32 0.01, %v494_v43 }
 0x152   :  { %v498_v45 = vmax.f32 %v494_v43, %v496_v44  ;;  %v3367_v43 = vpop.permute.xlu0 %3366 }
 0x153   :  { %v3369_v46 = vunpack.i.h.bf16 %v3367_v43  ;;  %v3368_v47 = vunpack.i.l.bf16 %v3367_v43 }
 0x154   :  { %673 = vrot.lane.b32.xlu1 %v497_v42, %s3431_s19 }
 0x158   :  { %519 = vrot.lane.b32.xlu1 %v498_v45, %s3427_s13  ;;  %s3458_s13 = smov [#allocation4]  }
 0x159   :  { %s3097_s14 = sshll.u32 %s3458_s13, 4  ;;  %s3098_s14 = int_to_ptr.vmem [resolvable:$true] %s3097_s14 }
 0x15a   :  { %s3405_s15 = scalar_lea.vmem %s3098_s14, 256  ;;  %p3410_p1 = scmp.lt.s32.totalorder %s3098_s14, %s3098_s14 }
 0x15b   :  { %p3406_p0 = scmp.ne.s32.totalorder %s3098_s14, %s3405_s15  ;;  %p3411_p2 = scmp.lt.s32.totalorder %s3405_s15, %s3405_s15 }
 0x15c   :  { %677 = vrot.lane.b32.xlu1 %v498_v45, %s3431_s19 }
 0x15d   :  { %p3412_p3 = por %p3411_p2, %p3410_p1 }
 0x15f   :  { %p3413_p4 = pnand %p3412_p3, %p3406_p0 }
 0x160   :  { %990 = vrot.lane.b32.xlu1 %v3494_v3, %s3439_s25 }
 0x164   :  { %987 = vperm.xlu1 %3359, %v3494_v3  }
 0x168   :  { %1144 = vrot.lane.b32.xlu1 %v3494_v3, %s3440_s26 }
 0x1c2   :  { %v516_v53 = vpop.permute.xlu1 %515 }
 0x1c3   :  { %v521_v54 = vsel %vm36_vm1, %v3352_v51, %v516_v53  ;;  %v522_v57 = vsel %vm36_vm1, %v516_v53, %v3351_v52 }
 0x1c4   :  { %559 = vmatprep.subr.mxu0 %v522_v57 }
 0x1c5   :  { %560 = vmatpush1.msra.mxu0 %v521_v54 }
 0x1c6   :  { %v674_v59 = vpop.permute.xlu1 %673  ;;  %3114 = vmatmul.mubr.msk.f32.vlgmr.msra.gmra.mxu0 %vm43_vm2, %v508_v48 }
 0x1c7   :  { %v679_v60 = vsel %vm194_vm3, %v3357_v55, %v674_v59  ;;  %v680_v61 = vsel %vm194_vm3, %v674_v59, %v3356_v56  ;;  %751 = vmatprep.mubr.f32.mxu0 %v3428_v4 }
 0x1c8   :  { %717 = vmatprep.subr.mxu0 %v680_v61 }
 0x1c9   :  { %718 = vmatpush1.msra.mxu0 %v679_v60 }
 0x1ca   :  { %v520_v62 = vpop.permute.xlu1 %519  ;;  %3116 = vmatmul.mubr.msk.f32.vlgmr.msra.gmra.mxu0 %vm43_vm2, %v670_v58  ;;  %3219 = vmatprep.subr.mxu0 %v3428_v4 }
 0x1cb   :  { %v523_v63 = vsel %vm36_vm1, %v3351_v52, %v520_v62  ;;  %3220 = vmatpush3.msra.mxu0 %v497_v42  ;;  %3221 = vmatprep.mubr.msk.f32.mxu0 %vm3429_vm0, %v3428_v4  ;;  %v3363_v42 = vunpack.i.l.bf16 %v3362_v39 }
 0x1cc   :  { %3210 = vmatpush3.msra.mxu1 %v523_v63  ;;  %1024 = vmatprep.subr.mxu0 %v3489_v2 }
 0x1cd   :  { %3212 = vmatmul.mubr.msk.f32.vlgmr.msra.gmra.mxu1 %vm43_vm2, %v508_v48  ;;  %3214 = vmatprep.subr.mxu1 %v3428_v4 }
 0x1ce   :  { %v678_v6 = vpop.permute.xlu1 %677  ;;  %3222 = vmatmul.mubr.msk.f32.vlgmr.msra.gmra.mxu0 %vm43_vm2, %v828_v1  ;;  %3216 = vmatprep.mubr.msk.f32.mxu1 %vm3429_vm0, %v3428_v4 }
 0x1cf   :  { %v681_v7 = vsel %vm194_vm3, %v3356_v56, %v678_v6  ;;  %1025 = vmatpush1.msra.mxu0 %v3478_v0  ;;  %1058 = vmatprep.mubr.f32.mxu0 %v3428_v4 }
 0x1d0   :  { %3215 = vmatpush3.msra.mxu1 %v681_v7 }
 0x1d1   :  { %3217 = vmatmul.mubr.msk.f32.vlgmr.msra.gmra.mxu1 %vm43_vm2, %v670_v58  ;;  %3224 = vmatprep.subr.mxu1 %v3428_v4 }
 0x1d2   :  { %3225 = vmatpush3.msra.mxu1 %v498_v45  ;;  %v991_v2 = vpop.permute.xlu1 %990  ;;  %3226 = vmatprep.mubr.msk.f32.mxu1 %vm3429_vm0, %v3428_v4 }
 0x1d3   :  { %3120 = vmatmul.mubr.msk.f32.vlgmr.msra.gmra.mxu0 %vm43_vm2, %v991_v2  ;;  %3229 = vmatprep.subr.mxu1 %v3428_v4 }
 0x1d4   :  { %1230 = vmatprep.mubr.f32.mxu0 %v3428_v4 }
 0x1d5   :  { %3227 = vmatmul.mubr.msk.f32.vlgmr.msra.gmra.mxu1 %vm43_vm2, %v828_v1 }
 0x1d6   :  { %3230 = vmatpush3.msra.mxu1 %v3510_v5  ;;  %3231 = vmatprep.mubr.msk.f32.mxu1 %vm3429_vm0, %v3428_v4 }
 0x1d7   :  { %3234 = vmatprep.subr.mxu1 %v3428_v4 }
 0x1d9   :  { %3232 = vmatmul.mubr.msk.f32.vlgmr.msra.gmra.mxu1 %vm43_vm2, %v991_v2 }
 0x1da   :  { %3236 = vmatprep.mubr.msk.f32.mxu1 %vm3429_vm0, %v3428_v4 }
 0x1df   :  { %v988_v19 = vpop.permute.xlu1 %987 }
 0x1e3   :  { %v1145_v40 = vpop.permute.xlu1 %1144 }
 0x286   :  { %v595_v0 = vpop.f32.mrf.mxu0 }
 0x288   :  { %v597_v5 = vpop.f32.mrf.mxu0 }
 0x28a   :  { %v753_v8 = vpop.f32.mrf.mxu0 }
 0x28b   :  { %v754_v10 = vadd.f32 %v753_v8, %v595_v0 }
 0x28c   :  { %v755_v9 = vpop.f32.mrf.mxu0 }
 0x28d   :  { %v665_v11 = vpop.f32.mrf.mxu1 }
 0x28e   :  { %v897_v12 = vpop.f32.mrf.mxu0 }
 0x28f   :  { %v971_v14 = vadd.f32 %v897_v12, %v754_v10  ;;  %v3213_v15 = vpop.f32.mrf.mxu1 }
 0x290   :  { %v3223_v16 = vpop.f32.mrf.mxu0 }
 0x291   :  { %v977_v17 = vadd.f32 %v975_v13, %v971_v14  ;;  %v823_v18 = vpop.f32.mrf.mxu1 }
 0x292   :  { %v824_v23 = vadd.f32 %v823_v18, %v665_v11 }
 0x293   :  { %v979_v20 = vmul.f32 0.01, %v977_v17  ;;  %v3218_v21 = vpop.f32.mrf.mxu1  ;;  %v1060_v22 = vpop.f32.mrf.mxu0 }
 0x294   :  { %v1061_v24 = vadd.f32 %v1060_v22, %v988_v19 }
 0x295   :  { %v981_v25 = vmax.f32 %v977_v17, %v979_v20  ;;  %v967_v26 = vpop.f32.mrf.mxu1  ;;  %v1062_v27 = vpop.f32.mrf.mxu0 }
 0x296   :  { %v972_v28 = vadd.f32 %v967_v26, %v824_v23 }
 0x297   :  { %v3602_v29 = vadd.f32 %v1061_v24, %v981_v25  ;;  %v3228_v30 = vpop.f32.mrf.mxu1 }
 0x298   :  { %v978_v31 = vadd.f32 %v975_v13, %v972_v28 }
 0x299   :  { %v1130_v32 = vpop.f32.mrf.mxu1  ;;  %1152 = vrot.lane.b32.xlu1 %v3602_v29, %s3431_s19 }
 0x29a   :  { %v980_v33 = vmul.f32 0.01, %v978_v31  ;;  %v1131_v36 = vadd.f32 %v1130_v32, %v988_v19  ;;  %v3448_v19 = vmov 108  }
 0x29b   :  { %v3233_v34 = vpop.f32.mrf.mxu1  ;;  %3381 = vset.pattern.permute.xlu1 %v3448_v19 }
 0x29c   :  { %v982_v35 = vmax.f32 %v978_v31, %v980_v33 }
 0x29d   :  { %1310 = vrot.lane.b32.xlu1 %v3602_v29, %s3441_s27 }
 0x29e   :  { %v3608_v37 = vadd.f32 %v1131_v36, %v982_v35 }
 0x2a0   :  { %1156 = vrot.lane.b32.xlu0 %v3608_v37, %s3431_s19 }
 0x2a1   :  { %1306 = vrot.lane.b32.xlu1 %v3494_v3, %s3443_s28 }
 0x2a4   :  { %1314 = vrot.lane.b32.xlu0 %v3608_v37, %s3441_s27 }
 0x2a5   :  { %1465 = vrot.lane.b32.xlu1 %v3494_v3, %s3444_s29 }
 0x2a8   :  { %1612 = vperm.xlu0 %3370, %v3494_v3  }
 0x2a9   :  { %3372 = vrot.lane.b32.xlu1 %v3428_v4, %s3431_s19 }
 0x2ac   :  { %1629 = vrot.lane.b32.xlu0 %v3494_v3, %s3445_s30 }
 0x30b   :  { %v1153_v44 = vpop.permute.xlu1 %1152 }
 0x30c   :  { %v1158_v45 = vsel %vm194_vm3, %v3364_v41, %v1153_v44  ;;  %v1159_v48 = vsel %vm194_vm3, %v1153_v44, %v3363_v42  ;;  %v3692_v41 = vld [vmem:[%s3782_s1 + $0x8] sm:$0xff]  ;;  %s3454_s1 = smov 114  }
 0x30d   :  { %1196 = vmatprep.subr.mxu0 %v1159_v48 }
 0x30e   :  { %1197 = vmatpush1.msra.mxu0 %v1158_v45 }
 0x30f   :  { %3122 = vmatmul.mubr.msk.f32.vlgmr.msra.gmra.mxu0 %vm43_vm2, %v1145_v40  ;;  %v1311_v49 = vpop.permute.xlu1 %1310 }
 0x310   :  { %v1317_v50 = vsel %vm1316_vm4, %v3369_v46, %v1311_v49  ;;  %v1318_v51 = vsel %vm1316_vm4, %v1311_v49, %v3368_v47  ;;  %1389 = vmatprep.mubr.f32.mxu0 %v3428_v4 }
 0x311   :  { %1355 = vmatprep.subr.mxu0 %v1318_v51 }
 0x312   :  { %v1157_v52 = vpop.permute.xlu0 %1156  ;;  %1356 = vmatpush1.msra.mxu0 %v1317_v50 }
 0x313   :  { %v1160_v53 = vsel %vm194_vm3, %v3363_v42, %v1157_v52  ;;  %3244 = vmatprep.subr.mxu0 %v3428_v4  ;;  %v1307_v54 = vpop.permute.xlu1 %1306 }
 0x314   :  { %3235 = vmatpush3.msra.mxu1 %v1160_v53  ;;  %3124 = vmatmul.mubr.msk.f32.vlgmr.msra.gmra.mxu0 %vm43_vm2, %v1307_v54 }
 0x315   :  { %3245 = vmatpush3.msra.mxu0 %v3602_v29  ;;  %3237 = vmatmul.mubr.msk.f32.vlgmr.msra.gmra.mxu1 %vm43_vm2, %v1145_v40 }
 0x316   :  { %v1315_v55 = vpop.permute.xlu0 %1314  ;;  %3239 = vmatprep.subr.mxu1 %v3428_v4  ;;  %3246 = vmatprep.mubr.msk.f32.mxu0 %vm3429_vm0, %v3428_v4 }
 0x317   :  { %v1319_v56 = vsel %vm1316_vm4, %v3368_v47, %v1315_v55  ;;  %v1466_v57 = vpop.permute.xlu1 %1465  ;;  %3241 = vmatprep.mubr.msk.f32.mxu1 %vm3429_vm0, %v3428_v4 }
 0x318   :  { %3240 = vmatpush3.msra.mxu1 %v1319_v56  ;;  %3247 = vmatmul.mubr.msk.f32.vlgmr.msra.gmra.mxu0 %vm43_vm2, %v1466_v57 }
 0x319   :  { %3242 = vmatmul.mubr.msk.f32.vlgmr.msra.gmra.mxu1 %vm43_vm2, %v1307_v54  ;;  %3249 = vmatprep.subr.mxu1 %v3428_v4 }
 0x31a   :  { %3250 = vmatpush3.msra.mxu1 %v3608_v37  ;;  %3251 = vmatprep.mubr.msk.f32.mxu1 %vm3429_vm0, %v3428_v4 }
 0x31b   :  { %3254 = vmatprep.subr.mxu1 %v3428_v4  ;;  %1715 = vmatprep.mubr.f32.mxu0 %v3428_v4  ;;  %v3373_v20 = vpop.permute.xlu1 %3372 }
 0x31c   :  { %v3374_v22 = vunpack.i.l.bf16 %v3373_v20  ;;  %v3375_v25 = vunpack.i.h.bf16 %v3373_v20 }
 0x31d   :  { %3252 = vmatmul.mubr.msk.f32.vlgmr.msra.gmra.mxu1 %vm43_vm2, %v1466_v57 }
 0x31e   :  { %3256 = vmatprep.mubr.msk.f32.mxu1 %vm3429_vm0, %v3428_v4 }
 0x323   :  { %v1613_v7 = vpop.permute.xlu0 %1612 }
 0x327   :  { %v1630_v21 = vpop.permute.xlu0 %1629 }
 0x3cf   :  { %v1232_v58 = vpop.f32.mrf.mxu0 }
 0x3d1   :  { %v1234_v59 = vpop.f32.mrf.mxu0 }
 0x3d4   :  { %v1391_v60 = vpop.f32.mrf.mxu0 }
 0x3d5   :  { %v1302_v61 = vpop.f32.mrf.mxu1  ;;  %v1392_v63 = vadd.f32 %v1391_v60, %v1232_v58 }
 0x3d6   :  { %v1393_v62 = vpop.f32.mrf.mxu0 }
 0x3d7   :  { %v3238_v1 = vpop.f32.mrf.mxu1 }
 0x3d8   :  { %v1535_v6 = vpop.f32.mrf.mxu0 }
 0x3d9   :  { %v1609_v2 = vadd.f32 %v1535_v6, %v1392_v63  ;;  %v1461_v0 = vpop.f32.mrf.mxu1 }
 0x3da   :  { %v3248_v5 = vpop.f32.mrf.mxu0  ;;  %v1462_v10 = vadd.f32 %v1461_v0, %v1302_v61 }
 0x3db   :  { %v1615_v8 = vadd.f32 %v1613_v7, %v1609_v2  ;;  %v3243_v9 = vpop.f32.mrf.mxu1  ;;  %v3453_v2 = vmov 5  }
 0x3dc   :  { %3392 = vset.pattern.permute.xlu0 %v3453_v2 }
 0x3dd   :  { %v1617_v11 = vmul.f32 0.01, %v1615_v8  ;;  %v1605_v12 = vpop.f32.mrf.mxu1 }
 0x3de   :  { %v1610_v13 = vadd.f32 %v1605_v12, %v1462_v10 }
 0x3df   :  { %v1619_v14 = vmax.f32 %v1615_v8, %v1617_v11  ;;  %v3253_v15 = vpop.f32.mrf.mxu1 }
 0x3e0   :  { %v1616_v16 = vadd.f32 %v1613_v7, %v1610_v13 }
 0x3e1   :  { %1795 = vrot.lane.b32.xlu0 %v1619_v14, %s3441_s27 }
 0x3e2   :  { %v1618_v17 = vmul.f32 0.01, %v1616_v16 }
 0x3e4   :  { %v1620_v18 = vmax.f32 %v1616_v16, %v1618_v17 }
 0x3e5   :  { %1791 = vrot.lane.b32.xlu0 %v3494_v3, %s3446_s3 }
 0x3e6   :  { %1641 = vrot.lane.b32.xlu1 %v1620_v18, %s3431_s19 }
 0x3e9   :  { %1949 = vrot.lane.b32.xlu0 %v3494_v3, %s3447_s4 }
 0x3ea   :  { %1637 = vrot.lane.b32.xlu1 %v1619_v14, %s3431_s19 }
 0x3ee   :  { %3377 = vrot.lane.b32.xlu1 %v3428_v4, %s3441_s27 }
 0x3f2   :  { %1799 = vrot.lane.b32.xlu1 %v1620_v18, %s3441_s27 }
 0x3f6   :  { %2096 = vperm.xlu1 %3381, %v3494_v3  }
 0x3fa   :  { %3383 = vrot.lane.b32.xlu1 %v3428_v4, %s3441_s27 }
 0x3fe   :  { %2117 = vrot.lane.b32.xlu1 %v3494_v3, %s3449_s5 }
 0x402   :  { %3388 = vrot.lane.b32.xlu1 %v3428_v4, %s3450_s6 }
 0x406   :  { %2279 = vrot.lane.b32.xlu1 %v3494_v3, %s3451_s7 }
 0x40a   :  { %2443 = vrot.lane.b32.xlu1 %v3692_v41, %s3452_s10 }
 0x40e   :  { %3394 = vrot.lane.b32.xlu1 %v3428_v4, %s3441_s27 }
 0x412   :  { %2609 = vrot.lane.b32.xlu1 %v3692_v41, %s3454_s1 }
 0x453   :  { %v1796_v27 = vpop.permute.xlu0 %1795 }
 0x457   :  { %v1792_v34 = vpop.permute.xlu0 %1791 }
 0x458   :  { %v1642_v23 = vpop.permute.xlu1 %1641 }
 0x459   :  { %v1645_v24 = vsel %vm194_vm3, %v3374_v22, %v1642_v23 }
 0x45a   :  { %3255 = vmatpush3.msra.mxu1 %v1645_v24 }
 0x45b   :  { %3257 = vmatmul.mubr.msk.f32.vlgmr.msra.gmra.mxu1 %vm43_vm2, %v1630_v21  ;;  %3259 = vmatprep.subr.mxu1 %v3428_v4  ;;  %v1950_v40 = vpop.permute.xlu0 %1949 }
 0x45c   :  { %v1638_v26 = vpop.permute.xlu1 %1637  ;;  %3261 = vmatprep.mubr.msk.f32.mxu1 %vm3429_vm0, %v3428_v4 }
 0x45d   :  { %v1643_v28 = vsel %vm194_vm3, %v3375_v25, %v1638_v26  ;;  %v1644_v30 = vsel %vm194_vm3, %v1638_v26, %v3374_v22 }
 0x45e   :  { %1681 = vmatprep.subr.mxu0 %v1644_v30 }
 0x45f   :  { %1682 = vmatpush1.msra.mxu0 %v1643_v28 }
 0x460   :  { %v3378_v31 = vpop.permute.xlu1 %3377  ;;  %3128 = vmatmul.mubr.msk.f32.vlgmr.msra.gmra.mxu0 %vm43_vm2, %v1630_v21 }
 0x461   :  { %v3380_v32 = vunpack.i.h.bf16 %v3378_v31  ;;  %v3379_v33 = vunpack.i.l.bf16 %v3378_v31  ;;  %1873 = vmatprep.mubr.f32.mxu0 %v3428_v4 }
 0x463   :  { %v1802_v35 = vsel %vm1316_vm4, %v1796_v27, %v3379_v33  ;;  %v1801_v36 = vsel %vm1316_vm4, %v3380_v32, %v1796_v27 }
 0x464   :  { %v1800_v38 = vpop.permute.xlu1 %1799  ;;  %1839 = vmatprep.subr.mxu0 %v1802_v35 }
 0x465   :  { %v1803_v39 = vsel %vm1316_vm4, %v3379_v33, %v1800_v38  ;;  %1840 = vmatpush1.msra.mxu0 %v1801_v36 }
 0x466   :  { %3130 = vmatmul.mubr.msk.f32.vlgmr.msra.gmra.mxu0 %vm43_vm2, %v1792_v34  ;;  %3260 = vmatpush3.msra.mxu1 %v1803_v39 }
 0x467   :  { %3264 = vmatprep.subr.mxu0 %v3428_v4  ;;  %3262 = vmatmul.mubr.msk.f32.vlgmr.msra.gmra.mxu1 %vm43_vm2, %v1792_v34 }
 0x468   :  { %3265 = vmatpush3.msra.mxu0 %v1619_v14  ;;  %3269 = vmatprep.subr.mxu1 %v3428_v4 }
 0x469   :  { %3270 = vmatpush3.msra.mxu1 %v1620_v18  ;;  %3266 = vmatprep.mubr.msk.f32.mxu0 %vm3429_vm0, %v3428_v4 }
 0x46a   :  { %3267 = vmatmul.mubr.msk.f32.vlgmr.msra.gmra.mxu0 %vm43_vm2, %v1950_v40  ;;  %3271 = vmatprep.mubr.msk.f32.mxu1 %vm3429_vm0, %v3428_v4 }
 0x46b   :  { %3272 = vmatmul.mubr.msk.f32.vlgmr.msra.gmra.mxu1 %vm43_vm2, %v1950_v40  ;;  %3274 = vmatprep.subr.mxu1 %v3428_v4 }
 0x46c   :  { %3276 = vmatprep.mubr.msk.f32.mxu1 %vm3429_vm0, %v3428_v4  ;;  %2203 = vmatprep.mubr.f32.mxu0 %v3428_v4 }
 0x471   :  { %v2097_v53 = vpop.permute.xlu1 %2096 }
 0x51b   :  { %v1787_v42 = vpop.f32.mrf.mxu1 }
 0x51d   :  { %v3258_v43 = vpop.f32.mrf.mxu1 }
 0x520   :  { %v1717_v44 = vpop.f32.mrf.mxu0 }
 0x522   :  { %v1719_v45 = vpop.f32.mrf.mxu0 }
 0x526   :  { %v1875_v46 = vpop.f32.mrf.mxu0 }
 0x527   :  { %v1945_v47 = vpop.f32.mrf.mxu1  ;;  %v1876_v49 = vadd.f32 %v1875_v46, %v1717_v44 }
 0x528   :  { %v1877_v48 = vpop.f32.mrf.mxu0  ;;  %v1946_v51 = vadd.f32 %v1945_v47, %v1787_v42 }
 0x529   :  { %v3263_v50 = vpop.f32.mrf.mxu1 }
 0x52a   :  { %v2019_v52 = vpop.f32.mrf.mxu0  ;;  %v3455_v50 = vmov 30  }
 0x52b   :  { %v2093_v54 = vadd.f32 %v2019_v52, %v1876_v49  ;;  %v2089_v55 = vpop.f32.mrf.mxu1  ;;  %3403 = vset.pattern.permute.xlu1 %v3455_v50 }
 0x52c   :  { %v2094_v56 = vadd.f32 %v2089_v55, %v1946_v51  ;;  %v3268_v57 = vpop.f32.mrf.mxu0 }
 0x52d   :  { %v2099_v58 = vadd.f32 %v2097_v53, %v2093_v54  ;;  %v3273_v59 = vpop.f32.mrf.mxu1 }
 0x52e   :  { %v2100_v60 = vadd.f32 %v2097_v53, %v2094_v56 }
 0x52f   :  { %v2101_v61 = vmul.f32 0.01, %v2099_v58 }
 0x530   :  { %v2102_v62 = vmul.f32 0.01, %v2100_v60 }
 0x531   :  { %v2103_v1 = vmax.f32 %v2099_v58, %v2101_v61 }
 0x532   :  { %v2104_v63 = vmax.f32 %v2100_v60, %v2102_v62 }
 0x533   :  { %v3702_v7 = vadd.f32 %v2103_v1, %v3602_v29 }
 0x534   :  { %v3697_v6 = vadd.f32 %v2104_v63, %v3608_v37  ;;  %v3384_v37 = vpop.permute.xlu1 %3383 }
 0x535   :  { %v3385_v29 = vunpack.i.l.bf16 %v3384_v37  ;;  %v3386_v8 = vunpack.i.h.bf16 %v3384_v37 }
 0x536   :  { %2129 = vrot.lane.b32.xlu0 %v3697_v6, %s3441_s27 }
 0x538   :  { %v2118_v0 = vpop.permute.xlu1 %2117 }
 0x53a   :  { %2125 = vrot.lane.b32.xlu0 %v3702_v7, %s3441_s27 }
 0x53c   :  { %v3389_v10 = vpop.permute.xlu1 %3388 }
 0x53d   :  { %v3391_v12 = vunpack.i.h.bf16 %v3389_v10  ;;  %v3390_v13 = vunpack.i.l.bf16 %v3389_v10 }
 0x53e   :  { %2283 = vrot.lane.b32.xlu0 %v3702_v7, %s3450_s6 }
 0x540   :  { %v2280_v16 = vpop.permute.xlu1 %2279 }
 0x542   :  { %2287 = vrot.lane.b32.xlu0 %v3697_v6, %s3450_s6 }
 0x544   :  { %v2444_v21 = vpop.permute.xlu1 %2443 }
 0x546   :  { %2441 = vrot.lane.b32.xlu0 %v3494_v3, %s3452_s10 }
 0x548   :  { %v3395_v51 = vpop.permute.xlu1 %3394 }
 0x549   :  { %v3397_v53 = vunpack.i.h.bf16 %v3395_v51  ;;  %v3396_v54 = vunpack.i.l.bf16 %v3395_v51 }
 0x54a   :  { %2592 = vperm.xlu0 %3392, %v3692_v41  }
 0x54c   :  { %v2610_v52 = vpop.permute.xlu1 %2609 }
 0x54e   :  { %3404 = vset.pattern.permute.xlu0 %v3455_v50 }
 0x5a8   :  { %v2130_v5 = vpop.permute.xlu0 %2129 }
 0x5a9   :  { %v2133_v9 = vsel %vm1316_vm4, %v3385_v29, %v2130_v5 }
 0x5aa   :  { %3275 = vmatpush3.msra.mxu1 %v2133_v9 }
 0x5ab   :  { %3277 = vmatmul.mubr.msk.f32.vlgmr.msra.gmra.mxu1 %vm43_vm2, %v2118_v0  ;;  %3279 = vmatprep.subr.mxu1 %v3428_v4 }
 0x5ac   :  { %v2126_v11 = vpop.permute.xlu0 %2125  ;;  %3281 = vmatprep.mubr.msk.f32.mxu1 %vm3429_vm0, %v3428_v4 }
 0x5ad   :  { %v2131_v3 = vsel %vm1316_vm4, %v3386_v8, %v2126_v11  ;;  %v2132_v14 = vsel %vm1316_vm4, %v2126_v11, %v3385_v29 }
 0x5ae   :  { %2169 = vmatprep.subr.mxu0 %v2132_v14 }
 0x5af   :  { %2170 = vmatpush1.msra.mxu0 %v2131_v3 }
 0x5b0   :  { %3134 = vmatmul.mubr.msk.f32.vlgmr.msra.gmra.mxu0 %vm43_vm2, %v2118_v0  ;;  %v2284_v15 = vpop.permute.xlu0 %2283 }
 0x5b1   :  { %v2289_v17 = vsel %vm43_vm2, %v3391_v12, %v2284_v15  ;;  %v2290_v18 = vsel %vm43_vm2, %v2284_v15, %v3390_v13  ;;  %2361 = vmatprep.mubr.f32.mxu0 %v3428_v4 }
 0x5b2   :  { %2327 = vmatprep.subr.mxu0 %v2290_v18 }
 0x5b3   :  { %2328 = vmatpush1.msra.mxu0 %v2289_v17 }
 0x5b4   :  { %3136 = vmatmul.mubr.msk.f32.vlgmr.msra.gmra.mxu0 %vm43_vm2, %v2280_v16  ;;  %3284 = vmatprep.subr.mxu0 %v3428_v4  ;;  %v2288_v19 = vpop.permute.xlu0 %2287 }
 0x5b5   :  { %v2291_v20 = vsel %vm43_vm2, %v3390_v13, %v2288_v19  ;;  %3285 = vmatpush3.msra.mxu0 %v3702_v7  ;;  %3286 = vmatprep.mubr.msk.f32.mxu0 %vm3429_vm0, %v3428_v4 }
 0x5b6   :  { %3280 = vmatpush3.msra.mxu1 %v2291_v20 }
 0x5b7   :  { %3282 = vmatmul.mubr.msk.f32.vlgmr.msra.gmra.mxu1 %vm43_vm2, %v2280_v16  ;;  %3289 = vmatprep.subr.mxu1 %v3428_v4 }
 0x5b8   :  { %3290 = vmatpush3.msra.mxu1 %v3697_v6  ;;  %v2442_v22 = vpop.permute.xlu0 %2441  ;;  %3291 = vmatprep.mubr.msk.f32.mxu1 %vm3429_vm0, %v3428_v4 }
 0x5b9   :  { %v2446_v23 = vsel %vm2445_vm5, %v2442_v22, %v2444_v21  ;;  %3294 = vmatprep.subr.mxu1 %v3428_v4 }
 0x5ba   :  { %3287 = vmatmul.mubr.msk.f32.vlgmr.msra.gmra.mxu0 %vm43_vm2, %v2446_v23 }
 0x5bb   :  { %3292 = vmatmul.mubr.msk.f32.vlgmr.msra.gmra.mxu1 %vm43_vm2, %v2446_v23  ;;  %2695 = vmatprep.mubr.f32.mxu0 %v3428_v4 }
 0x5bc   :  { %3296 = vmatprep.mubr.msk.f32.mxu1 %vm3429_vm0, %v3428_v4 }
 0x5c5   :  { %v2593_v36 = vpop.permute.xlu0 %2592 }
 0x66b   :  { %v2275_v24 = vpop.f32.mrf.mxu1 }
 0x66d   :  { %v3278_v25 = vpop.f32.mrf.mxu1 }
 0x670   :  { %v2205_v26 = vpop.f32.mrf.mxu0 }
 0x672   :  { %v2207_v27 = vpop.f32.mrf.mxu0 }
 0x674   :  { %v2363_v28 = vpop.f32.mrf.mxu0 }
 0x675   :  { %v2364_v32 = vadd.f32 %v2363_v28, %v2205_v26 }
 0x676   :  { %v2365_v30 = vpop.f32.mrf.mxu0 }
 0x677   :  { %v2433_v31 = vpop.f32.mrf.mxu1 }
 0x678   :  { %v2434_v34 = vadd.f32 %v2433_v31, %v2275_v24 }
 0x679   :  { %v3283_v33 = vpop.f32.mrf.mxu1 }
 0x67a   :  { %v2515_v35 = vpop.f32.mrf.mxu0 }
 0x67b   :  { %v2589_v38 = vadd.f32 %v2515_v35, %v2364_v32  ;;  %v2585_v39 = vpop.f32.mrf.mxu1 }
 0x67c   :  { %v2590_v40 = vadd.f32 %v2585_v39, %v2434_v34  ;;  %v3288_v42 = vpop.f32.mrf.mxu0 }
 0x67d   :  { %v2595_v43 = vadd.f32 %v2593_v36, %v2589_v38  ;;  %v3293_v44 = vpop.f32.mrf.mxu1 }
 0x67e   :  { %v2596_v45 = vadd.f32 %v2593_v36, %v2590_v40 }
 0x67f   :  { %v2597_v46 = vmul.f32 0.01, %v2595_v43 }
 0x680   :  { %v2598_v47 = vmul.f32 0.01, %v2596_v45 }
 0x681   :  { %v2599_v48 = vmax.f32 %v2595_v43, %v2597_v46 }
 0x682   :  { %v2600_v49 = vmax.f32 %v2596_v45, %v2598_v47 }
 0x683   :  { %2617 = vrot.lane.b32.xlu1 %v2599_v48, %s3441_s27 }
 0x684   :  { %2621 = vrot.lane.b32.xlu0 %v2600_v49, %s3441_s27 }
 0x687   :  { %3399 = vrot.lane.b32.xlu1 %v3428_v4, %s3450_s6 }
 0x688   :  { %2775 = vrot.lane.b32.xlu0 %v2599_v48, %s3450_s6 }
 0x68b   :  { %2771 = vrot.lane.b32.xlu1 %v3692_v41, %s3456_s11 }
 0x68c   :  { %2779 = vrot.lane.b32.xlu0 %v2600_v49, %s3450_s6 }
 0x68f   :  { %3076 = vperm.xlu1 %3403, %v3692_v41  }
 0x690   :  { %2929 = vrot.lane.b32.xlu0 %v3692_v41, %s3457_s12 }
 0x6f5   :  { %v2618_v55 = vpop.permute.xlu1 %2617 }
 0x6f6   :  { %v2623_v56 = vsel %vm1316_vm4, %v3397_v53, %v2618_v55  ;;  %v2622_v57 = vpop.permute.xlu0 %2621  ;;  %v2624_v58 = vsel %vm1316_vm4, %v2618_v55, %v3396_v54 }
 0x6f7   :  { %v2625_v59 = vsel %vm1316_vm4, %v3396_v54, %v2622_v57  ;;  %2661 = vmatprep.subr.mxu0 %v2624_v58 }
 0x6f8   :  { %2662 = vmatpush1.msra.mxu0 %v2623_v56  ;;  %3295 = vmatpush3.msra.mxu1 %v2625_v59 }
 0x6f9   :  { %3140 = vmatmul.mubr.msk.f32.vlgmr.msra.gmra.mxu0 %vm43_vm2, %v2610_v52  ;;  %3297 = vmatmul.mubr.msk.f32.vlgmr.msra.gmra.mxu1 %vm43_vm2, %v2610_v52  ;;  %v3400_v41 = vpop.permute.xlu1 %3399 }
 0x6fa   :  { %v3402_v60 = vunpack.i.h.bf16 %v3400_v41  ;;  %v3401_v61 = vunpack.i.l.bf16 %v3400_v41  ;;  %v2776_v62 = vpop.permute.xlu0 %2775  ;;  %2853 = vmatprep.mubr.f32.mxu0 %v3428_v4  ;;  %3299 = vmatprep.subr.mxu1 %v3428_v4 }
 0x6fb   :  { %3301 = vmatprep.mubr.msk.f32.mxu1 %vm3429_vm0, %v3428_v4 }
 0x6fc   :  { %v2781_v63 = vsel %vm43_vm2, %v3402_v60, %v2776_v62  ;;  %v2782_v1 = vsel %vm43_vm2, %v2776_v62, %v3401_v61 }
 0x6fd   :  { %2819 = vmatprep.subr.mxu0 %v2782_v1  ;;  %v2772_v2 = vpop.permute.xlu1 %2771 }
 0x6fe   :  { %v2780_v37 = vpop.permute.xlu0 %2779  ;;  %2820 = vmatpush1.msra.mxu0 %v2781_v63 }
 0x6ff   :  { %v2783_v0 = vsel %vm43_vm2, %v3401_v61, %v2780_v37  ;;  %3142 = vmatmul.mubr.msk.f32.vlgmr.msra.gmra.mxu0 %vm43_vm2, %v2772_v2  ;;  %3304 = vmatprep.subr.mxu0 %v3428_v4 }
 0x700   :  { %3300 = vmatpush3.msra.mxu1 %v2783_v0  ;;  %3305 = vmatpush3.msra.mxu0 %v2599_v48 }
 0x701   :  { %3302 = vmatmul.mubr.msk.f32.vlgmr.msra.gmra.mxu1 %vm43_vm2, %v2772_v2  ;;  %3309 = vmatprep.subr.mxu1 %v3428_v4 }
 0x702   :  { %v2930_v29 = vpop.permute.xlu0 %2929  ;;  %3306 = vmatprep.mubr.msk.f32.mxu0 %vm3429_vm0, %v3428_v4  ;;  %3310 = vmatpush3.msra.mxu1 %v2600_v49 }
 0x703   :  { %3307 = vmatmul.mubr.msk.f32.vlgmr.msra.gmra.mxu0 %vm43_vm2, %v2930_v29  ;;  %3311 = vmatprep.mubr.msk.f32.mxu1 %vm3429_vm0, %v3428_v4 }
 0x705   :  { %3312 = vmatmul.mubr.msk.f32.vlgmr.msra.gmra.mxu1 %vm43_vm2, %v2930_v29 }
 0x70a   :  { %v3077_v14 = vpop.permute.xlu1 %3076 }
 0x7b9   :  { %v2697_v5 = vpop.f32.mrf.mxu0  ;;  %v2767_v8 = vpop.f32.mrf.mxu1 }
 0x7bb   :  { %v2699_v9 = vpop.f32.mrf.mxu0  ;;  %v3298_v10 = vpop.f32.mrf.mxu1 }
 0x7bf   :  { %v2855_v11 = vpop.f32.mrf.mxu0 }
 0x7c0   :  { %v2856_v13 = vadd.f32 %v2855_v11, %v2697_v5 }
 0x7c1   :  { %v2857_v3 = vpop.f32.mrf.mxu0  ;;  %v2925_v12 = vpop.f32.mrf.mxu1 }
 0x7c2   :  { %v2926_v17 = vadd.f32 %v2925_v12, %v2767_v8 }
 0x7c3   :  { %v3303_v15 = vpop.f32.mrf.mxu1  ;;  %v2999_v16 = vpop.f32.mrf.mxu0 }
 0x7c4   :  { %v3073_v18 = vadd.f32 %v2999_v16, %v2856_v13 }
 0x7c5   :  { %v3069_v19 = vpop.f32.mrf.mxu1  ;;  %v3308_v20 = vpop.f32.mrf.mxu0 }
 0x7c6   :  { %v3079_v21 = vadd.f32 %v3077_v14, %v3073_v18  ;;  %v3074_v22 = vadd.f32 %v3069_v19, %v2926_v17 }
 0x7c7   :  { %v3313_v4 = vpop.f32.mrf.mxu1 }
 0x7c8   :  { %v3081_v23 = vmul.f32 0.01, %v3079_v21  ;;  %v3080_v24 = vadd.f32 %v3077_v14, %v3074_v22 }
 0x7ca   :  { %v3083_v25 = vmax.f32 %v3079_v21, %v3081_v23  ;;  %v3082_v26 = vmul.f32 0.01, %v3080_v24 }
 0x7cc   :  { %v3087_v27 = vadd.f32 %v3083_v25, %v3702_v7  ;;  %v3084_v28 = vmax.f32 %v3080_v24, %v3082_v26 }
 0x7ce   :  { %3089 = vst [vmem:[#allocation4] sm:$0xff] %v3087_v27  ;;  %v3088_v30 = vadd.f32 %v3084_v28, %v3697_v6 }
 0x7d0   :  { %3091 = vst [vmem:[#allocation4 + $0x8] sm:$0xff] %v3088_v30 }
 0x7d1   :  { %3416 = shalt.err (!%p3413_p4)
}
 0x7d2   :  { %s3459_s16 = smov 128  }
 0x7d3   :  { %3103 = dma.vmem_to_hbm [thread:$0]  %s3098_s14, 256, %s3783_s2, [#allocation5], %s3459_s16, %s3459_s16, %s3450_s6  }
 0x7d4   :  { %3425 = dma.done.wait [#allocation5], 256  }
 0x7d5   :  { %3426 = vsyncadd [#allocation5], 4294967040 }
 0x7d6   :  { %3107 = vsyncpa [#allocation5], 1 }

</bundles_post_ra>
